<compile_context>
chip_gen: v7x
topology: tpu7x:2x2x1
jax: 0.10.0
libtpu: 0.0.40
codegen_flags: <defaults>
</compile_context>

<pallas_src>
import functools

import jax
import jax.numpy as jnp
from jax.experimental import pallas as pl
from jax.experimental.pallas import tpu as pltpu

LS = 120        # hidden width from the PyTorch module
HP = 128        # padded hidden width (lane-aligned)
OP = 128        # padded output width (real outputs are columns 0:2)


def mlp_kernel(x_ref, w1_ref, b1_ref, wh_ref, bh_ref, w6_ref, b6_ref, o_ref,
               *, bf16_act):
    """One batch tile of the full 6-layer MLP. Weights are VMEM-resident."""

    # Layer 1: (TB,1) x (1,128) is a degenerate K=1 contraction -> VPU broadcast
    # multiply-add. Affine folding turned the sigmoid into a bare tanh.
    h = jnp.tanh(x_ref[...] * w1_ref[...] + b1_ref[...])          # (TB, HP) f32
    h = h.astype(jnp.bfloat16)                                     # MXU input

    # Hidden layers 2..5: bf16 MXU matmuls with f32 accumulation, bare tanh.
    for i in range(4):
        z = jnp.dot(h, wh_ref[i], preferred_element_type=jnp.float32) + bh_ref[i]
        if bf16_act:
            h = jnp.tanh(z.astype(jnp.bfloat16))      # bf16 EUP path (v6e/v7x)
        else:
            h = jnp.tanh(z).astype(jnp.bfloat16)      # f32 EUP path (v5e)

    # Output layer: padded to 128 lanes -> unmasked, lane-dense store.
    out = jnp.dot(h, w6_ref[...], preferred_element_type=jnp.float32) + b6_ref[...]
    o_ref[...] = out.astype(o_ref.dtype)


def prepare_params(params):
    """Pad/pack PyTorch-semantics params ((in,out) W, (1,out) b, f32) and fold
    the sigmoid affine into the weights.

    sigmoid(z) = 0.5*tanh(0.5*z) + 0.5, so with t_k = tanh(0.5*z_k):
      layer 1 (produces sigmoid):      W' = 0.5*W1,  b' = 0.5*b1
      layers 2..5 (consume + produce): W' = 0.25*Wk, b' = 0.5*bk + 0.25*colsum(Wk)
      layer 6 (consumes sigmoid):      W' = 0.5*W6,  b' = b6 + 0.5*colsum(W6)
    Pad rows/cols stay exactly zero, so tanh(0)=0 in pad lanes leaks nothing.
    """
    (w1, b1) = params[0]
    hidden = params[1:5]
    (w6, b6) = params[5]

    w1p = jnp.zeros((1, HP), jnp.float32).at[:, :LS].set(0.5 * w1)
    b1p = jnp.zeros((1, HP), jnp.float32).at[:, :LS].set(0.5 * b1)

    wh = jnp.zeros((4, HP, HP), jnp.bfloat16)
    bh = jnp.zeros((4, 1, HP), jnp.float32)
    for i, (w, b) in enumerate(hidden):
        wf = 0.25 * w                                           # power-of-2 scale: exact in bf16
        bf = 0.5 * b + 0.25 * jnp.sum(w, axis=0, keepdims=True)
        wh = wh.at[i, :LS, :LS].set(wf.astype(jnp.bfloat16))    # pad rows/cols stay 0
        bh = bh.at[i, :, :LS].set(bf)

    w6f = 0.5 * w6
    b6f = b6 + 0.5 * jnp.sum(w6, axis=0, keepdims=True)
    w6p = jnp.zeros((HP, OP), jnp.bfloat16).at[:LS, :2].set(w6f.astype(jnp.bfloat16))
    b6p = jnp.zeros((1, OP), jnp.float32).at[:, :2].set(b6f)

    return w1p, b1p, wh, bh, w6p, b6p


def pick_batch_tile(n, tb_max=1024, align=128):
    """Large tiles amortize per-step overhead; for small/medium N keep the tile
    count even so v7x's two TensorCores split the parallel axis evenly."""
    if n <= align:
        return align
    half = pl.cdiv(n, 2)
    return min(tb_max, pl.cdiv(half, align) * align)


def _use_bf16_activations():
    """bf16 tanh on v6e/v7x (bf16 EUP/VPU); keep f32 tanh on v5e."""
    try:
        kind = jax.devices()[0].device_kind.lower()
    except Exception:
        return False
    if "v5 lite" in kind or "v5e" in kind or "v5litepod" in kind:
        return False
    return True


def network_forward(x, prepared, tb=None, bf16_act=None):
    """x: (N, 1) float32.  prepared: output of prepare_params()."""
    w1, b1, wh, bh, w6, b6 = prepared
    n = x.shape[0]

    if tb is None:
        tb = pick_batch_tile(n)
    if bf16_act is None:
        bf16_act = _use_bf16_activations()

    n_tiles = pl.cdiv(n, tb)
    n_pad = n_tiles * tb
    if n_pad != n:
        x = jnp.pad(x, ((0, n_pad - n), (0, 0)))   # pad rows are zeros, sliced off

    weight_bytes = (w1.size + b1.size + bh.size + b6.size) * 4 + (wh.size + w6.size) * 2
    cost = pl.CostEstimate(
        flops=2 * n_pad * (HP + 4 * HP * HP + HP * OP),
        transcendentals=5 * n_pad * HP,
        bytes_accessed=n_pad * (4 + 4 * OP) + weight_bytes,
    )

    kernel = functools.partial(mlp_kernel, bf16_act=bf16_act)

    out_padded = pl.pallas_call(
        kernel,
        out_shape=jax.ShapeDtypeStruct((n_pad, OP), jnp.float32),
        grid=(n_tiles,),
        in_specs=[
            pl.BlockSpec((tb, 1), lambda i: (i, 0)),          # x: tiled over rows
            pl.BlockSpec((1, HP), lambda i: (0, 0)),          # w1 (VMEM-resident)
            pl.BlockSpec((1, HP), lambda i: (0, 0)),          # b1
            pl.BlockSpec((4, HP, HP), lambda i: (0, 0, 0)),   # packed hidden W
            pl.BlockSpec((4, 1, HP), lambda i: (0, 0, 0)),    # packed hidden b
            pl.BlockSpec((HP, OP), lambda i: (0, 0)),         # w6
            pl.BlockSpec((1, OP), lambda i: (0, 0)),          # b6
        ],
        out_specs=pl.BlockSpec((tb, OP), lambda i: (i, 0)),
        compiler_params=pltpu.CompilerParams(
            dimension_semantics=("parallel",)),
        cost_estimate=cost,
    )(x, w1, b1, wh, bh, w6, b6)

    return out_padded[:n, :2]


def init_params(key):
    """Deterministic synthetic weights, PyTorch Linear init, stored (in,out)/(1,out)."""
    dims = [(1, LS), (LS, LS), (LS, LS), (LS, LS), (LS, LS), (LS, 2)]
    params = []
    for (fan_in, fan_out) in dims:
        key, kw, kb = jax.random.split(key, 3)
        bound = 1.0 / jnp.sqrt(fan_in)  # PyTorch default U(-1/sqrt(in), 1/sqrt(in))
        w = jax.random.uniform(kw, (fan_in, fan_out), jnp.float32, -bound, bound)
        b = jax.random.uniform(kb, (1, fan_out), jnp.float32, -bound, bound)
        params.append((w, b))
    return params


def reference_forward(x, params):
    """Pure-JAX f32 reference with exact sigmoid (matches the PyTorch module)."""
    h = x
    for i, (w, b) in enumerate(params):
        h = h @ w + b
        if i < len(params) - 1:
            h = jax.nn.sigmoid(h)
    return h


if __name__ == "__main__":
    key = jax.random.PRNGKey(0)
    key, kx = jax.random.split(key)

    batch = 300  # not a multiple of the tile -> exercises padding; 2 even tiles
    x = jax.random.uniform(kx, (batch, 1), jnp.float32)  # e.g. time points in [0,1)

    params = init_params(key)
    prepared = prepare_params(params)

    out = network_forward(x, prepared)
    out = jax.block_until_ready(out)

    ref = reference_forward(x, params)
    assert out.shape == (batch, 2)
    # bf16 matmuls/activations + tanh-form sigmoid vs exact f32 reference.
    err = float(jnp.max(jnp.abs(out - ref)))
    assert err < 1e-2, err

    print("KERNEL_OK")
</pallas_src>

<mosaic_0001>
module attributes {stable_mosaic.version = 11 : i64} {
  func.func @mlp_kernel(%arg0: i32, %arg1: memref<256x1xf32, #tpu.memory_space<vmem>>, %arg2: memref<1x128xf32, #tpu.memory_space<vmem>>, %arg3: memref<1x128xf32, #tpu.memory_space<vmem>>, %arg4: memref<4x128x128xbf16, #tpu.memory_space<vmem>>, %arg5: memref<4x1x128xf32, #tpu.memory_space<vmem>>, %arg6: memref<128x128xbf16, #tpu.memory_space<vmem>>, %arg7: memref<1x128xf32, #tpu.memory_space<vmem>>, %arg8: memref<256x128xf32, #tpu.memory_space<vmem>>) attributes {dimension_semantics = [#tpu.dimension_semantics<parallel>], iteration_bounds = array<i64: 2>, scalar_prefetch = 0 : i64, scratch_operands = 0 : i64, tpu.core_type = #tpu.core_type<tc>, window_params = [{transform_indices = @transform_0, window_bounds = array<i64: 256, 1>}, {pipeline_mode = #tpu.pipeline_mode<synchronous>, transform_indices = @transform_1, window_bounds = array<i64: 1, 128>}, {pipeline_mode = #tpu.pipeline_mode<synchronous>, transform_indices = @transform_2, window_bounds = array<i64: 1, 128>}, {pipeline_mode = #tpu.pipeline_mode<synchronous>, transform_indices = @transform_3, window_bounds = array<i64: 4, 128, 128>}, {pipeline_mode = #tpu.pipeline_mode<synchronous>, transform_indices = @transform_4, window_bounds = array<i64: 4, 1, 128>}, {pipeline_mode = #tpu.pipeline_mode<synchronous>, transform_indices = @transform_5, window_bounds = array<i64: 128, 128>}, {pipeline_mode = #tpu.pipeline_mode<synchronous>, transform_indices = @transform_6, window_bounds = array<i64: 1, 128>}, {transform_indices = @transform_7, window_bounds = array<i64: 256, 128>}]} {
    %c0 = arith.constant 0 : index
    %c0_0 = arith.constant 0 : index
    %0 = vector.load %arg1[%c0, %c0_0] : memref<256x1xf32, #tpu.memory_space<vmem>>, vector<256x1xf32>
    %c0_1 = arith.constant 0 : index
    %c0_2 = arith.constant 0 : index
    %1 = vector.load %arg2[%c0_1, %c0_2] : memref<1x128xf32, #tpu.memory_space<vmem>>, vector<1x128xf32>
    %2 = vector.broadcast %0 : vector<256x1xf32> to vector<256x128xf32>
    %3 = vector.broadcast %1 : vector<1x128xf32> to vector<256x128xf32>
    %4 = arith.mulf %2, %3 : vector<256x128xf32>
    %c0_3 = arith.constant 0 : index
    %c0_4 = arith.constant 0 : index
    %5 = vector.load %arg3[%c0_3, %c0_4] : memref<1x128xf32, #tpu.memory_space<vmem>>, vector<1x128xf32>
    %6 = vector.broadcast %5 : vector<1x128xf32> to vector<256x128xf32>
    %7 = arith.addf %4, %6 : vector<256x128xf32>
    %8 = math.tanh %7 : vector<256x128xf32>
    %9 = arith.truncf %8 : vector<256x128xf32> to vector<256x128xbf16>
    %c0_5 = arith.constant 0 : index
    %c0_6 = arith.constant 0 : index
    %c0_7 = arith.constant 0 : index
    %10 = vector.load %arg4[%c0_5, %c0_6, %c0_7] : memref<4x128x128xbf16, #tpu.memory_space<vmem>>, vector<1x128x128xbf16>
    %11 = vector.shape_cast %10 : vector<1x128x128xbf16> to vector<128x128xbf16>
    %cst = arith.constant dense<0.000000e+00> : vector<256x128xf32>
    %12 = tpu.matmul %9, %11, %cst {dimension_numbers = #tpu.dot_dimension_numbers<[1], [0], [0], [1], [0, 0, 1, 1], [], []>} : vector<256x128xbf16>, vector<128x128xbf16>, vector<256x128xf32> -> vector<256x128xf32>
    %c0_8 = arith.constant 0 : index
    %c0_9 = arith.constant 0 : index
    %c0_10 = arith.constant 0 : index
    %13 = vector.load %arg5[%c0_8, %c0_9, %c0_10] : memref<4x1x128xf32, #tpu.memory_space<vmem>>, vector<1x1x128xf32>
    %14 = vector.shape_cast %13 : vector<1x1x128xf32> to vector<1x128xf32>
    %15 = vector.broadcast %14 : vector<1x128xf32> to vector<256x128xf32>
    %16 = arith.addf %12, %15 : vector<256x128xf32>
    %17 = arith.truncf %16 : vector<256x128xf32> to vector<256x128xbf16>
    %18 = math.tanh %17 : vector<256x128xbf16>
    %c1 = arith.constant 1 : index
    %c0_11 = arith.constant 0 : index
    %c0_12 = arith.constant 0 : index
    %19 = vector.load %arg4[%c1, %c0_11, %c0_12] : memref<4x128x128xbf16, #tpu.memory_space<vmem>>, vector<1x128x128xbf16>
    %20 = vector.shape_cast %19 : vector<1x128x128xbf16> to vector<128x128xbf16>
    %cst_13 = arith.constant dense<0.000000e+00> : vector<256x128xf32>
    %21 = tpu.matmul %18, %20, %cst_13 {dimension_numbers = #tpu.dot_dimension_numbers<[1], [0], [0], [1], [0, 0, 1, 1], [], []>} : vector<256x128xbf16>, vector<128x128xbf16>, vector<256x128xf32> -> vector<256x128xf32>
    %c1_14 = arith.constant 1 : index
    %c0_15 = arith.constant 0 : index
    %c0_16 = arith.constant 0 : index
    %22 = vector.load %arg5[%c1_14, %c0_15, %c0_16] : memref<4x1x128xf32, #tpu.memory_space<vmem>>, vector<1x1x128xf32>
    %23 = vector.shape_cast %22 : vector<1x1x128xf32> to vector<1x128xf32>
    %24 = vector.broadcast %23 : vector<1x128xf32> to vector<256x128xf32>
    %25 = arith.addf %21, %24 : vector<256x128xf32>
    %26 = arith.truncf %25 : vector<256x128xf32> to vector<256x128xbf16>
    %27 = math.tanh %26 : vector<256x128xbf16>
    %c2 = arith.constant 2 : index
    %c0_17 = arith.constant 0 : index
    %c0_18 = arith.constant 0 : index
    %28 = vector.load %arg4[%c2, %c0_17, %c0_18] : memref<4x128x128xbf16, #tpu.memory_space<vmem>>, vector<1x128x128xbf16>
    %29 = vector.shape_cast %28 : vector<1x128x128xbf16> to vector<128x128xbf16>
    %cst_19 = arith.constant dense<0.000000e+00> : vector<256x128xf32>
    %30 = tpu.matmul %27, %29, %cst_19 {dimension_numbers = #tpu.dot_dimension_numbers<[1], [0], [0], [1], [0, 0, 1, 1], [], []>} : vector<256x128xbf16>, vector<128x128xbf16>, vector<256x128xf32> -> vector<256x128xf32>
    %c2_20 = arith.constant 2 : index
    %c0_21 = arith.constant 0 : index
    %c0_22 = arith.constant 0 : index
    %31 = vector.load %arg5[%c2_20, %c0_21, %c0_22] : memref<4x1x128xf32, #tpu.memory_space<vmem>>, vector<1x1x128xf32>
    %32 = vector.shape_cast %31 : vector<1x1x128xf32> to vector<1x128xf32>
    %33 = vector.broadcast %32 : vector<1x128xf32> to vector<256x128xf32>
    %34 = arith.addf %30, %33 : vector<256x128xf32>
    %35 = arith.truncf %34 : vector<256x128xf32> to vector<256x128xbf16>
    %36 = math.tanh %35 : vector<256x128xbf16>
    %c3 = arith.constant 3 : index
    %c0_23 = arith.constant 0 : index
    %c0_24 = arith.constant 0 : index
    %37 = vector.load %arg4[%c3, %c0_23, %c0_24] : memref<4x128x128xbf16, #tpu.memory_space<vmem>>, vector<1x128x128xbf16>
    %38 = vector.shape_cast %37 : vector<1x128x128xbf16> to vector<128x128xbf16>
    %cst_25 = arith.constant dense<0.000000e+00> : vector<256x128xf32>
    %39 = tpu.matmul %36, %38, %cst_25 {dimension_numbers = #tpu.dot_dimension_numbers<[1], [0], [0], [1], [0, 0, 1, 1], [], []>} : vector<256x128xbf16>, vector<128x128xbf16>, vector<256x128xf32> -> vector<256x128xf32>
    %c3_26 = arith.constant 3 : index
    %c0_27 = arith.constant 0 : index
    %c0_28 = arith.constant 0 : index
    %40 = vector.load %arg5[%c3_26, %c0_27, %c0_28] : memref<4x1x128xf32, #tpu.memory_space<vmem>>, vector<1x1x128xf32>
    %41 = vector.shape_cast %40 : vector<1x1x128xf32> to vector<1x128xf32>
    %42 = vector.broadcast %41 : vector<1x128xf32> to vector<256x128xf32>
    %43 = arith.addf %39, %42 : vector<256x128xf32>
    %44 = arith.truncf %43 : vector<256x128xf32> to vector<256x128xbf16>
    %45 = math.tanh %44 : vector<256x128xbf16>
    %c0_29 = arith.constant 0 : index
    %c0_30 = arith.constant 0 : index
    %46 = vector.load %arg6[%c0_29, %c0_30] : memref<128x128xbf16, #tpu.memory_space<vmem>>, vector<128x128xbf16>
    %cst_31 = arith.constant dense<0.000000e+00> : vector<256x128xf32>
    %47 = tpu.matmul %45, %46, %cst_31 {dimension_numbers = #tpu.dot_dimension_numbers<[1], [0], [0], [1], [0, 0, 1, 1], [], []>} : vector<256x128xbf16>, vector<128x128xbf16>, vector<256x128xf32> -> vector<256x128xf32>
    %c0_32 = arith.constant 0 : index
    %c0_33 = arith.constant 0 : index
    %48 = vector.load %arg7[%c0_32, %c0_33] : memref<1x128xf32, #tpu.memory_space<vmem>>, vector<1x128xf32>
    %49 = vector.broadcast %48 : vector<1x128xf32> to vector<256x128xf32>
    %50 = arith.addf %47, %49 : vector<256x128xf32>
    %c0_34 = arith.constant 0 : index
    %c0_35 = arith.constant 0 : index
    %51 = vector.load %arg8[%c0_34, %c0_35] : memref<256x128xf32, #tpu.memory_space<vmem>>, vector<256x128xf32>
    tpu.vector_store %arg8[%c0_34, %c0_35], %50 {strides = array<i32>} : memref<256x128xf32, #tpu.memory_space<vmem>>, vector<256x128xf32>,
    return
  }
  func.func @transform_0(%arg0: i32) -> (i32, i32) {
    %c0_i32 = arith.constant 0 : i32
    %c0_i32_0 = arith.constant 0 : i32
    return %arg0, %c0_i32 : i32, i32
  }
  func.func @transform_1(%arg0: i32) -> (i32, i32) {
    %c0_i32 = arith.constant 0 : i32
    %c0_i32_0 = arith.constant 0 : i32
    %c0_i32_1 = arith.constant 0 : i32
    return %c0_i32, %c0_i32_0 : i32, i32
  }
  func.func @transform_2(%arg0: i32) -> (i32, i32) {
    %c0_i32 = arith.constant 0 : i32
    %c0_i32_0 = arith.constant 0 : i32
    %c0_i32_1 = arith.constant 0 : i32
    return %c0_i32, %c0_i32_0 : i32, i32
  }
  func.func @transform_3(%arg0: i32) -> (i32, i32, i32) {
    %c0_i32 = arith.constant 0 : i32
    %c0_i32_0 = arith.constant 0 : i32
    %c0_i32_1 = arith.constant 0 : i32
    %c0_i32_2 = arith.constant 0 : i32
    return %c0_i32, %c0_i32_0, %c0_i32_1 : i32, i32, i32
  }
  func.func @transform_4(%arg0: i32) -> (i32, i32, i32) {
    %c0_i32 = arith.constant 0 : i32
    %c0_i32_0 = arith.constant 0 : i32
    %c0_i32_1 = arith.constant 0 : i32
    %c0_i32_2 = arith.constant 0 : i32
    return %c0_i32, %c0_i32_0, %c0_i32_1 : i32, i32, i32
  }
  func.func @transform_5(%arg0: i32) -> (i32, i32) {
    %c0_i32 = arith.constant 0 : i32
    %c0_i32_0 = arith.constant 0 : i32
    %c0_i32_1 = arith.constant 0 : i32
    return %c0_i32, %c0_i32_0 : i32, i32
  }
  func.func @transform_6(%arg0: i32) -> (i32, i32) {
    %c0_i32 = arith.constant 0 : i32
    %c0_i32_0 = arith.constant 0 : i32
    %c0_i32_1 = arith.constant 0 : i32
    return %c0_i32, %c0_i32_0 : i32, i32
  }
  func.func @transform_7(%arg0: i32) -> (i32, i32) {
    %c0_i32 = arith.constant 0 : i32
    %c0_i32_0 = arith.constant 0 : i32
    return %arg0, %c0_i32 : i32, i32
  }
}

</mosaic_0001>

<bundles_post_ra>
// kernel: tpu_custom_call.1
= control target key start
LH: loop header
LB: loop body
LE: loop exit
PB: predicated region body
PF: predicated region fallthrough
CT: control target
= control target key end

     0   :  { %12 = vsyncpa [#allocation3], 0  ;;  %s3430_s0 = inlined_call_operand.vmem [shape: f32[512,1], index: 0, kind: input, shape index: {}]   ;;  %s3431_s1 = inlined_call_operand.vmem [shape: f32[1,128], index: 1, kind: input, shape index: {}]   ;;  %s3432_s2 = inlined_call_operand.vmem [shape: f32[1,128], index: 2, kind: input, shape index: {}]   ;;  %s3433_s3 = inlined_call_operand.vmem [shape: bf16[4,128,128], index: 3, kind: input, shape index: {}]   ;;  %s3434_s4 = inlined_call_operand.vmem [shape: f32[4,1,128], index: 4, kind: input, shape index: {}]   ;;  %s3435_s5 = inlined_call_operand.vmem [shape: bf16[128,128], index: 5, kind: input, shape index: {}]   ;;  %s3436_s6 = inlined_call_operand.vmem [shape: f32[1,128], index: 6, kind: input, shape index: {}]   ;;  %s3437_s7 = inlined_call_operand.hbm [shape: f32[512,128], index: 7, kind: output, shape index: {}]  }
   0x1   :  { %14 = vsyncpa [#allocation3 + $0x1], 0  ;;  %s2872_s24 = smov 0   ;;  %s2874_s25 = smov 0  }
   0x2   :  { %s2876_s26 = smov 0   ;;  %s2878_s27 = smov 0  }
   0x3 LB: > { %s2893_s28 = sadd.s32 4294967295, %s2826_s27   ;;  %s2001_s29 = sadd.s32 4294967294, %s2826_s27   ;;  %s2826_s27 = sphi %s2878_s27, %s3443_s27   ;;  %s2822_s26 = sphi %s2876_s26, %s3442_s26   ;;  %s2818_s25 = sphi %s2874_s25, %s3441_s25   ;;  %s2814_s24 = sphi %s2872_s24, %s3440_s24  }
   0x4   : > { %s2897_s30 = sadd.s32 1, %s2826_s27   ;;  %s179_s8 = sadd.s32 1, %s2822_s26 }
   0x5   : > { %s176_s9 = ssub.s32 %s2826_s27, %s2897_s30  ;;  %p189_p0 = scmp.ne.s32.totalorder %s2822_s26, %s2818_s25 }
   0x6   : > { %p177_p1 = scmp.eq.s32.totalorder %s176_s9, 0  ;;  %p190_p2 = scmp.eq.s32.totalorder %s2893_s28, 1 }
   0x7   : > { %p195_p3 = scmp.ne.s32.totalorder %s2818_s25, %s2814_s24  ;;  %p196_p4 = scmp.eq.s32.totalorder %s2001_s29, 1 }
   0x8   : > { %s2908_s10 = scalar_select %p177_p1, %s2822_s26, %s179_s8  }
   0x9   : > { %p2910_p5 = por %p190_p2, %p189_p0  ;;  %p2914_p6 = por %p196_p4, %p195_p3 }
   0xa   : > { %p2004_p7 = scmp.ge.s32.totalorder %s2826_s27, 1  ;;  %p241_p8 = scmp.lt.s32.totalorder %s2826_s27, 3 }
   0xc   : > { %p242_p9 = pnand %p2004_p7, %p241_p8 }
   0xd   : > { %s2006_s13 = sshll.u32 (!%p242_p9), %s2893_s28, 5  ;;  %v2828_v0 = vmov (!%p242_p9), 0   ;;  %v2532_v1 = vld [vmem:[%s3433_s3] sm:$0xff] (!%p242_p9)   ;;  %v2533_v2 = vld [vmem:[%s3433_s3 + $0x8] sm:$0xff] (!%p242_p9)   ;;  %v2534_v3 = vld [vmem:[%s3433_s3 + $0x10] sm:$0xff] (!%p242_p9)   ;;  %s2111_s17 = sshll.u32 (!%p242_p9), %s2893_s28, 12 }
   0xe   : > { %245 = sbr.rel (%p242_p9) target bundleno = 1392 (0x570), region = 48  ;;  %2531 = vset.pattern.permute.xlu1 (!%p242_p9), %v2828_v0  ;;  %2530 = vset.pattern.permute.xlu0 (!%p242_p9), %v2828_v0  ;;  %p274_p10 = scmp.lt.s32.totalorder (!%p242_p9), %s2006_s13, 63  ;;  %v2535_v12 = vld [vmem:[%s3433_s3 + $0x18] sm:$0xff] (!%p242_p9)   ;;  %v2536_v13 = vld [vmem:[%s3433_s3 + $0x20] sm:$0xff] (!%p242_p9)   ;;  %v2537_v16 = vld [vmem:[%s3433_s3 + $0x28] sm:$0xff] (!%p242_p9)  }
   0xf   : > { %2232 = vmatprep.subr.bf16.mxu0 (!%p242_p9), %v2532_v1  ;;  %2472 = vmatprep.subr.bf16.mxu1 (!%p242_p9), %v2532_v1  ;;  %v2538_v19 = vld [vmem:[%s3433_s3 + $0x30] sm:$0xff] (!%p242_p9)   ;;  %v2539_v22 = vld [vmem:[%s3433_s3 + $0x38] sm:$0xff] (!%p242_p9)   ;;  %v2985_v41 = vld [vmem:[%s3433_s3 + $0x40] sm:$0xff] (!%p242_p9)   ;;  %s3379_s21 = scalar_lea.hbm (!%p242_p9), %s3437_s7, %s2111_s17  ;;  %s2829_s29 = smov (!%p242_p9), [#allocation2]  }
  0x10   : > { %2233 = vmatpush3.bf16.msra.mxu0 (!%p242_p9), %v2532_v1  ;;  %2480 = vmatpush3.bf16.msra.mxu1 (!%p242_p9), %v2532_v1  ;;  %v2991_v42 = vld [vmem:[%s3431_s1] ss:$0 sm:$0xff] (!%p242_p9)  ;;  %s2768_s8 = sshll.u32 (!%p242_p9), %s2829_s29, 4  ;;  %s2769_s8 = int_to_ptr.vmem [resolvable:$false] %s2768_s8 }
  0x11   : > { %2234 = vmatprep.subr.bf16.mxu0 (!%p242_p9), %v2533_v2  ;;  %2473 = vmatprep.subr.bf16.mxu1 (!%p242_p9), %v2533_v2  ;;  %v2996_v43 = vld [vmem:[%s3432_s2] ss:$0 sm:$0xff] (!%p242_p9)  ;;  %s2770_s9 = scalar_lea.vmem (!%p242_p9), %s2769_s8, 8192 }
  0x14   : > { %2235 = vmatpush3.bf16.msra.mxu0 (!%p242_p9), %v2533_v2  ;;  %2481 = vmatpush3.bf16.msra.mxu1 (!%p242_p9), %v2533_v2 }
  0x15   : > { %s3445_s13 = smov (!%p274_p10, %s2006_s13), 63  ;;  %2236 = vmatprep.subr.bf16.mxu0 %v2534_v3  ;;  %2474 = vmatprep.subr.bf16.mxu1 %v2534_v3 }
  0x16   : > { %s2007_s18 = sshll.u32 %s3445_s13, 3 }
  0x17   : > { %s2933_s23 = scalar_lea.vmem %s3430_s0, %s2007_s18 }
  0x18   : > { %v283_v4 = vld [vmem:[%s2933_s23 + $0x10] sm:$0xff]  ;;  %v281_v5 = vld [vmem:[%s2933_s23] sm:$0xff]  ;;  %v284_v6 = vld [vmem:[%s2933_s23 + $0x18] sm:$0xff]  ;;  %2237 = vmatpush3.bf16.msra.mxu0 %v2534_v3  ;;  %2482 = vmatpush3.bf16.msra.mxu1 %v2534_v3 }
  0x19   : > { %326 = vperm.xlu1 %2531, %v283_v4   ;;  %316 = vperm.xlu0 %2530, %v281_v5   ;;  %v282_v7 = vld [vmem:[%s2933_s23 + $0x8] sm:$0xff]  ;;  %v285_v9 = vld [vmem:[%s2933_s23 + $0x20] sm:$0xff]  ;;  %v288_v10 = vld [vmem:[%s2933_s23 + $0x38] sm:$0xff] }
  0x1a   : > { %v286_v8 = vld [vmem:[%s2933_s23 + $0x28] sm:$0xff]  ;;  %v287_v11 = vld [vmem:[%s2933_s23 + $0x30] sm:$0xff]  ;;  %v289_v15 = vld [vmem:[%s2933_s23 + $0x40] sm:$0xff]  ;;  %2238 = vmatprep.subr.bf16.mxu0 %v2535_v12  ;;  %2475 = vmatprep.subr.bf16.mxu1 %v2535_v12 }
  0x1b   : > { %v290_v14 = vld [vmem:[%s2933_s23 + $0x48] sm:$0xff]  ;;  %v292_v17 = vld [vmem:[%s2933_s23 + $0x58] sm:$0xff]  ;;  %v291_v18 = vld [vmem:[%s2933_s23 + $0x50] sm:$0xff] }
  0x1c   : > { %2239 = vmatpush3.bf16.msra.mxu0 %v2535_v12  ;;  %2483 = vmatpush3.bf16.msra.mxu1 %v2535_v12  ;;  %v294_v20 = vld [vmem:[%s2933_s23 + $0x68] sm:$0xff]  ;;  %v293_v21 = vld [vmem:[%s2933_s23 + $0x60] sm:$0xff]  ;;  %v296_v23 = vld [vmem:[%s2933_s23 + $0x78] sm:$0xff] }
  0x1d   : > { %331 = vperm.xlu1 %2531, %v284_v6   ;;  %321 = vperm.xlu0 %2530, %v282_v7   ;;  %v295_v24 = vld [vmem:[%s2933_s23 + $0x70] sm:$0xff]  ;;  %v298_v25 = vld [vmem:[%s2933_s23 + $0x88] sm:$0xff]  ;;  %v297_v26 = vld [vmem:[%s2933_s23 + $0x80] sm:$0xff] }
  0x1e   : > { %2240 = vmatprep.subr.bf16.mxu0 %v2536_v13  ;;  %2476 = vmatprep.subr.bf16.mxu1 %v2536_v13  ;;  %v300_v27 = vld [vmem:[%s2933_s23 + $0x98] sm:$0xff]  ;;  %v299_v28 = vld [vmem:[%s2933_s23 + $0x90] sm:$0xff]  ;;  %v302_v29 = vld [vmem:[%s2933_s23 + $0xa8] sm:$0xff] }
  0x1f   : > { %v301_v30 = vld [vmem:[%s2933_s23 + $0xa0] sm:$0xff]  ;;  %v304_v31 = vld [vmem:[%s2933_s23 + $0xb8] sm:$0xff]  ;;  %v303_v32 = vld [vmem:[%s2933_s23 + $0xb0] sm:$0xff] }
  0x20   : > { %2241 = vmatpush3.bf16.msra.mxu0 %v2536_v13  ;;  %2484 = vmatpush3.bf16.msra.mxu1 %v2536_v13  ;;  %v306_v33 = vld [vmem:[%s2933_s23 + $0xc8] sm:$0xff]  ;;  %v305_v34 = vld [vmem:[%s2933_s23 + $0xc0] sm:$0xff]  ;;  %v308_v35 = vld [vmem:[%s2933_s23 + $0xd8] sm:$0xff] }
  0x21   : > { %341 = vperm.xlu1 %2531, %v286_v8   ;;  %336 = vperm.xlu0 %2530, %v285_v9   ;;  %v307_v36 = vld [vmem:[%s2933_s23 + $0xd0] sm:$0xff]  ;;  %v310_v37 = vld [vmem:[%s2933_s23 + $0xe8] sm:$0xff]  ;;  %v309_v38 = vld [vmem:[%s2933_s23 + $0xe0] sm:$0xff] }
  0x22   : > { %2242 = vmatprep.subr.bf16.mxu0 %v2537_v16  ;;  %2477 = vmatprep.subr.bf16.mxu1 %v2537_v16  ;;  %v312_v39 = vld [vmem:[%s2933_s23 + $0xf8] sm:$0xff]  ;;  %v311_v40 = vld [vmem:[%s2933_s23 + $0xf0] sm:$0xff]  ;;  %s270_s23 = sand.u32 1, %s2818_s25  }
  0x23   : > { %s2005_s13 = sshll.u32 %s270_s23, 8  ;;  %s3389_s28 = scalar_lea.sflag [#allocation3], %s270_s23 }
  0x24   : > { %2243 = vmatpush3.bf16.msra.mxu0 %v2537_v16  ;;  %2485 = vmatpush3.bf16.msra.mxu1 %v2537_v16  ;;  %s3314_s16 = scalar_lea.vmem [#allocation2], %s2005_s13 }
  0x25   : > { %351 = vperm.xlu1 %2531, %v288_v10   ;;  %346 = vperm.xlu0 %2530, %v287_v11   ;;  %s1939_s18 = sshll.u32 %s3314_s16, 4  ;;  %s3381_s18 = int_to_ptr.vmem [resolvable:$true] %s1939_s18 }
  0x26   : > { %2244 = vmatprep.subr.bf16.mxu0 %v2538_v19  ;;  %2478 = vmatprep.subr.bf16.mxu1 %v2538_v19  ;;  %s2764_s22 = scalar_lea.vmem %s3381_s18, 4096  ;;  %p2771_p0 = scmp.lt.s32.totalorder %s3381_s18, %s2769_s8 }
  0x27   : > { %p2765_p11 = scmp.ne.s32.totalorder %s3381_s18, %s2764_s22  ;;  %p2772_p1 = scmp.lt.s32.totalorder %s2770_s9, %s2764_s22 }
  0x28   : > { %2245 = vmatpush3.bf16.msra.mxu0 %v2538_v19  ;;  %2486 = vmatpush3.bf16.msra.mxu1 %v2538_v19 }
  0x29   : > { %361 = vperm.xlu1 %2531, %v290_v14   ;;  %356 = vperm.xlu0 %2530, %v289_v15   ;;  %p2766_p12 = pnand %p2765_p11, %p2910_p5  ;;  %p2773_p2 = por %p2772_p1, %p2771_p0 }
  0x2a   : > { %2246 = vmatprep.subr.bf16.mxu0 %v2539_v22  ;;  %2479 = vmatprep.subr.bf16.mxu1 %v2539_v22 }
  0x2b   : > { %p2767_p13 = pneg %p2766_p12 }
  0x2c   : > { %2247 = vmatpush3.bf16.msra.mxu0 %v2539_v22  ;;  %2487 = vmatpush3.bf16.msra.mxu1 %v2539_v22 }
  0x2d   : > { %371 = vperm.xlu1 %2531, %v292_v17   ;;  %366 = vperm.xlu0 %2530, %v291_v18   ;;  %p2774_p3 = pnand %p2773_p2, %p2767_p13 }
  0x2e   : > { %2280 = vmatprep.subr.bf16.mxu1 %v2985_v41 }
  0x31   : > { %381 = vperm.xlu1 %2531, %v294_v20   ;;  %376 = vperm.xlu0 %2530, %v293_v21  }
  0x35   : > { %391 = vperm.xlu1 %2531, %v296_v23   ;;  %386 = vperm.xlu0 %2530, %v295_v24  }
  0x39   : > { %401 = vperm.xlu1 %2531, %v298_v25   ;;  %396 = vperm.xlu0 %2530, %v297_v26  }
  0x3d   : > { %411 = vperm.xlu1 %2531, %v300_v27   ;;  %406 = vperm.xlu0 %2530, %v299_v28  }
  0x41   : > { %421 = vperm.xlu1 %2531, %v302_v29   ;;  %416 = vperm.xlu0 %2530, %v301_v30  }
  0x45   : > { %431 = vperm.xlu1 %2531, %v304_v31   ;;  %426 = vperm.xlu0 %2530, %v303_v32  }
  0x49   : > { %441 = vperm.xlu1 %2531, %v306_v33   ;;  %436 = vperm.xlu0 %2530, %v305_v34  }
  0x4d   : > { %451 = vperm.xlu1 %2531, %v308_v35   ;;  %446 = vperm.xlu0 %2530, %v307_v36  }
  0x51   : > { %461 = vperm.xlu1 %2531, %v310_v37   ;;  %456 = vperm.xlu0 %2530, %v309_v38  }
  0x55   : > { %471 = vperm.xlu1 %2531, %v312_v39   ;;  %466 = vperm.xlu0 %2530, %v311_v40  }
  0x98   : > { %v327_v44 = vpop.permute.xlu1 %326  ;;  %v317_v45 = vpop.permute.xlu0 %316 }
  0x99   : > { %v482_v46 = vmul.f32 %v2991_v42, %v327_v44  ;;  %v480_v47 = vmul.f32 %v2991_v42, %v317_v45 }
  0x9b   : > { %v521_v48 = vadd.f32 %v2996_v43, %v482_v46  ;;  %v519_v49 = vadd.f32 %v2996_v43, %v480_v47 }
  0x9c   : > { %v332_v50 = vpop.permute.xlu1 %331  ;;  %v322_v51 = vpop.permute.xlu0 %321 }
  0x9d   : > { %v483_v52 = vmul.f32 %v2991_v42, %v332_v50  ;;  %v481_v53 = vmul.f32 %v2991_v42, %v322_v51  ;;  %2572 = vtanh.f32 %v521_v48 }
  0x9e   : > { %2574 = vtanh.f32 %v519_v49 }
  0x9f   : > { %v522_v54 = vadd.f32 %v2996_v43, %v483_v52  ;;  %v520_v55 = vadd.f32 %v2996_v43, %v481_v53 }
  0xa0   : > { %v342_v56 = vpop.permute.xlu1 %341  ;;  %v337_v57 = vpop.permute.xlu0 %336 }
  0xa1   : > { %2576 = vtanh.f32 %v522_v54  ;;  %v485_v58 = vmul.f32 %v2991_v42, %v342_v56  ;;  %v484_v59 = vmul.f32 %v2991_v42, %v337_v57 }
  0xa2   : > { %2578 = vtanh.f32 %v520_v55 }
  0xa3   : > { %v524_v60 = vadd.f32 %v2996_v43, %v485_v58  ;;  %v523_v61 = vadd.f32 %v2996_v43, %v484_v59 }
  0xa4   : > { %v352_v62 = vpop.permute.xlu1 %351  ;;  %v347_v63 = vpop.permute.xlu0 %346 }
  0xa5   : > { %2580 = vtanh.f32 %v524_v60  ;;  %v487_v0 = vmul.f32 %v2991_v42, %v352_v62  ;;  %v486_v1 = vmul.f32 %v2991_v42, %v347_v63 }
  0xa6   : > { %2582 = vtanh.f32 %v523_v61 }
  0xa7   : > { %v526_v2 = vadd.f32 %v2996_v43, %v487_v0  ;;  %v525_v3 = vadd.f32 %v2996_v43, %v486_v1  ;;  %v2573_v6 = vpop.eup %2572 }
  0xa8   : > { %v362_v4 = vpop.permute.xlu1 %361  ;;  %v357_v5 = vpop.permute.xlu0 %356 }
  0xa9   : > { %2584 = vtanh.f32 %v526_v2  ;;  %v489_v7 = vmul.f32 %v2991_v42, %v362_v4  ;;  %v488_v8 = vmul.f32 %v2991_v42, %v357_v5  ;;  %v2575_v9 = vpop.eup %2574 }
  0xaa   : > { %2586 = vtanh.f32 %v525_v3 }
  0xab   : > { %v2577_v10 = vpop.eup %2576  ;;  %v528_v11 = vadd.f32 %v2996_v43, %v489_v7  ;;  %v527_v12 = vadd.f32 %v2996_v43, %v488_v8 }
  0xac   : > { %v2579_v13 = vpop.eup %2578  ;;  %v372_v14 = vpop.permute.xlu1 %371  ;;  %v584_v16 = vpack.c.bf16 %v2577_v10, %v2573_v6 }
  0xad   : > { %v367_v15 = vpop.permute.xlu0 %366  ;;  %2588 = vtanh.f32 %v528_v11  ;;  %v491_v17 = vmul.f32 %v2991_v42, %v372_v14  ;;  %v583_v19 = vpack.c.bf16 %v2579_v13, %v2575_v9 }
  0xae   : > { %v490_v18 = vmul.f32 %v2991_v42, %v367_v15  ;;  %2590 = vtanh.f32 %v527_v12 }
  0xaf   : > { %v2581_v20 = vpop.eup %2580  ;;  %v530_v21 = vadd.f32 %v2996_v43, %v491_v17  ;;  %2248 = vmatprep.mubr.bf16.mxu0 %v583_v19 }
  0xb0   : > { %v529_v22 = vadd.f32 %v2996_v43, %v490_v18  ;;  %v2583_v23 = vpop.eup %2582  ;;  %2249 = vmatmul.mubr.bf16.vlgmr.msra.gmra.mrb[0].mxu0 %v584_v16  ;;  %v382_v24 = vpop.permute.xlu1 %381 }
  0xb1   : > { %v377_v25 = vpop.permute.xlu0 %376  ;;  %2592 = vtanh.f32 %v530_v21  ;;  %v493_v26 = vmul.f32 %v2991_v42, %v382_v24  ;;  %v585_v28 = vpack.c.bf16 %v2581_v20, %v2583_v23 }
  0xb2   : > { %v492_v27 = vmul.f32 %v2991_v42, %v377_v25  ;;  %2594 = vtanh.f32 %v529_v22 }
  0xb3   : > { %v2585_v29 = vpop.eup %2584  ;;  %v532_v30 = vadd.f32 %v2996_v43, %v493_v26  ;;  %2252 = vmatprep.mubr.bf16.mxu0 %v585_v28 }
  0xb4   : > { %v531_v31 = vadd.f32 %v2996_v43, %v492_v27  ;;  %v2587_v32 = vpop.eup %2586  ;;  %v392_v33 = vpop.permute.xlu1 %391 }
  0xb5   : > { %v387_v34 = vpop.permute.xlu0 %386  ;;  %2596 = vtanh.f32 %v532_v30  ;;  %v495_v35 = vmul.f32 %v2991_v42, %v392_v33  ;;  %v586_v37 = vpack.c.bf16 %v2585_v29, %v2587_v32 }
  0xb6   : > { %v494_v36 = vmul.f32 %v2991_v42, %v387_v34  ;;  %2598 = vtanh.f32 %v531_v31  ;;  %v2541_v31 = vld [vmem:[%s3433_s3 + $0x48] sm:$0xff]  }
  0xb7   : > { %v2589_v38 = vpop.eup %2588  ;;  %v534_v39 = vadd.f32 %v2996_v43, %v495_v35 }
  0xb8   : > { %v533_v40 = vadd.f32 %v2996_v43, %v494_v36  ;;  %v2591_v44 = vpop.eup %2590  ;;  %2253 = vmatmul.mubr.bf16.gmra.mrb[4].mxu0 %v586_v37  ;;  %v402_v45 = vpop.permute.xlu1 %401 }
  0xb9   : > { %v397_v46 = vpop.permute.xlu0 %396  ;;  %2600 = vtanh.f32 %v534_v39  ;;  %v497_v47 = vmul.f32 %v2991_v42, %v402_v45  ;;  %v587_v49 = vpack.c.bf16 %v2589_v38, %v2591_v44  ;;  %v2542_v44 = vld [vmem:[%s3433_s3 + $0x50] sm:$0xff]  }
  0xba   : > { %v496_v48 = vmul.f32 %v2991_v42, %v397_v46  ;;  %2602 = vtanh.f32 %v533_v40 }
  0xbb   : > { %v2593_v50 = vpop.eup %2592  ;;  %v536_v51 = vadd.f32 %v2996_v43, %v497_v47  ;;  %2256 = vmatprep.mubr.bf16.mxu0 %v587_v49 }
  0xbc   : > { %v535_v52 = vadd.f32 %v2996_v43, %v496_v48  ;;  %v2595_v53 = vpop.eup %2594  ;;  %v412_v54 = vpop.permute.xlu1 %411 }
  0xbd   : > { %v407_v55 = vpop.permute.xlu0 %406  ;;  %2604 = vtanh.f32 %v536_v51  ;;  %v499_v56 = vmul.f32 %v2991_v42, %v412_v54  ;;  %v588_v58 = vpack.c.bf16 %v2593_v50, %v2595_v53 }
  0xbe   : > { %v498_v57 = vmul.f32 %v2991_v42, %v407_v55  ;;  %2606 = vtanh.f32 %v535_v52 }
  0xbf   : > { %v2597_v59 = vpop.eup %2596  ;;  %v538_v60 = vadd.f32 %v2996_v43, %v499_v56 }
  0xc0   : > { %v537_v61 = vadd.f32 %v2996_v43, %v498_v57  ;;  %v2599_v62 = vpop.eup %2598  ;;  %2257 = vmatmul.mubr.bf16.gmra.mrb[8].mxu0 %v588_v58  ;;  %v422_v63 = vpop.permute.xlu1 %421 }
  0xc1   : > { %v417_v0 = vpop.permute.xlu0 %416  ;;  %2608 = vtanh.f32 %v538_v60  ;;  %v501_v1 = vmul.f32 %v2991_v42, %v422_v63  ;;  %v589_v3 = vpack.c.bf16 %v2597_v59, %v2599_v62 }
  0xc2   : > { %v500_v2 = vmul.f32 %v2991_v42, %v417_v0  ;;  %2610 = vtanh.f32 %v537_v61 }
  0xc3   : > { %v2601_v4 = vpop.eup %2600  ;;  %v540_v5 = vadd.f32 %v2996_v43, %v501_v1  ;;  %2260 = vmatprep.mubr.bf16.mxu0 %v589_v3  ;;  %v2545_v3 = vld [vmem:[%s3433_s3 + $0x68] sm:$0xff]  }
  0xc4   : > { %v539_v6 = vadd.f32 %v2996_v43, %v500_v2  ;;  %v2603_v7 = vpop.eup %2602  ;;  %v432_v8 = vpop.permute.xlu1 %431  ;;  %v2544_v2 = vld [vmem:[%s3433_s3 + $0x60] sm:$0xff]  }
  0xc5   : > { %v427_v9 = vpop.permute.xlu0 %426  ;;  %2612 = vtanh.f32 %v540_v5  ;;  %v503_v10 = vmul.f32 %v2991_v42, %v432_v8  ;;  %v590_v12 = vpack.c.bf16 %v2601_v4, %v2603_v7  ;;  %v2546_v4 = vld [vmem:[%s3433_s3 + $0x70] sm:$0xff]   ;;  %v2547_v5 = vld [vmem:[%s3433_s3 + $0x78] sm:$0xff]   ;;  %v2549_v7 = vld [vmem:[%s3433_s3 + $0x88] sm:$0xff]  }
  0xc6   : > { %v502_v11 = vmul.f32 %v2991_v42, %v427_v9  ;;  %2614 = vtanh.f32 %v539_v6  ;;  %v2548_v6 = vld [vmem:[%s3433_s3 + $0x80] sm:$0xff]   ;;  %v2550_v8 = vld [vmem:[%s3433_s3 + $0x90] sm:$0xff]  }
  0xc7   : > { %v2605_v13 = vpop.eup %2604  ;;  %v542_v14 = vadd.f32 %v2996_v43, %v503_v10  ;;  %2328 = vmatprep.subr.bf16.mxu0 %v2548_v6  ;;  %v3096_v10 = vld [vmem:[%s3434_s4] ss:$0 sm:$0xff] }
  0xc8   : > { %v541_v15 = vadd.f32 %v2996_v43, %v502_v11  ;;  %v2607_v16 = vpop.eup %2606  ;;  %2261 = vmatmul.mubr.bf16.gmra.mrb[12].mxu0 %v590_v12  ;;  %v442_v17 = vpop.permute.xlu1 %441 }
  0xc9   : > { %v437_v18 = vpop.permute.xlu0 %436  ;;  %2616 = vtanh.f32 %v542_v14  ;;  %v505_v19 = vmul.f32 %v2991_v42, %v442_v17  ;;  %v591_v21 = vpack.c.bf16 %v2605_v13, %v2607_v16  ;;  %2329 = vmatpush3.bf16.msra.mxu0 %v2548_v6 }
  0xca   : > { %v504_v20 = vmul.f32 %v2991_v42, %v437_v18  ;;  %2618 = vtanh.f32 %v541_v15  ;;  %2330 = vmatprep.subr.bf16.mxu0 %v2549_v7 }
  0xcb   : > { %v2609_v22 = vpop.eup %2608  ;;  %v544_v23 = vadd.f32 %v2996_v43, %v505_v19  ;;  %2264 = vmatprep.mubr.bf16.mxu1 %v591_v21 }
  0xcc   : > { %v543_v24 = vadd.f32 %v2996_v43, %v504_v20  ;;  %v2611_v25 = vpop.eup %2610  ;;  %v452_v26 = vpop.permute.xlu1 %451 }
  0xcd   : > { %v447_v27 = vpop.permute.xlu0 %446  ;;  %2620 = vtanh.f32 %v544_v23  ;;  %v507_v28 = vmul.f32 %v2991_v42, %v452_v26  ;;  %v592_v30 = vpack.c.bf16 %v2609_v22, %v2611_v25  ;;  %2331 = vmatpush3.bf16.msra.mxu0 %v2549_v7 }
  0xce   : > { %v506_v29 = vmul.f32 %v2991_v42, %v447_v27  ;;  %2622 = vtanh.f32 %v543_v24  ;;  %2332 = vmatprep.subr.bf16.mxu0 %v2550_v8 }
  0xcf   : > { %v2613_v32 = vpop.eup %2612  ;;  %v546_v33 = vadd.f32 %v2996_v43, %v507_v28  ;;  %2265 = vmatmul.mubr.bf16.vlgmr.msra.gmra.mrb[0].mxu1 %v592_v30 }
  0xd0   : > { %v545_v34 = vadd.f32 %v2996_v43, %v506_v29  ;;  %v2615_v35 = vpop.eup %2614  ;;  %v462_v36 = vpop.permute.xlu1 %461  ;;  %2281 = vmatpush3.bf16.msra.mxu1 %v2985_v41 }
  0xd1   : > { %v457_v37 = vpop.permute.xlu0 %456  ;;  %2624 = vtanh.f32 %v546_v33  ;;  %v509_v38 = vmul.f32 %v2991_v42, %v462_v36  ;;  %v593_v40 = vpack.c.bf16 %v2613_v32, %v2615_v35  ;;  %2282 = vmatprep.subr.bf16.mxu1 %v2541_v31  ;;  %2333 = vmatpush3.bf16.msra.mxu0 %v2550_v8 }
  0xd2   : > { %v508_v39 = vmul.f32 %v2991_v42, %v457_v37  ;;  %2626 = vtanh.f32 %v545_v34 }
  0xd3   : > { %v2617_v45 = vpop.eup %2616  ;;  %v548_v46 = vadd.f32 %v2996_v43, %v509_v38  ;;  %2268 = vmatprep.mubr.bf16.mxu1 %v593_v40 }
  0xd4   : > { %v547_v47 = vadd.f32 %v2996_v43, %v508_v39  ;;  %v2619_v48 = vpop.eup %2618  ;;  %v472_v41 = vpop.permute.xlu1 %471  ;;  %2283 = vmatpush3.bf16.msra.mxu1 %v2541_v31 }
  0xd5   : > { %v467_v49 = vpop.permute.xlu0 %466  ;;  %2628 = vtanh.f32 %v548_v46  ;;  %v511_v50 = vmul.f32 %v2991_v42, %v472_v41  ;;  %v594_v52 = vpack.c.bf16 %v2617_v45, %v2619_v48  ;;  %2284 = vmatprep.subr.bf16.mxu1 %v2542_v44 }
  0xd6   : > { %v510_v51 = vmul.f32 %v2991_v42, %v467_v49  ;;  %2630 = vtanh.f32 %v547_v47 }
  0xd7   : > { %v2621_v53 = vpop.eup %2620  ;;  %v550_v54 = vadd.f32 %v2996_v43, %v511_v50  ;;  %2269 = vmatmul.mubr.bf16.gmra.mrb[4].mxu1 %v594_v52 }
  0xd8   : > { %v549_v55 = vadd.f32 %v2996_v43, %v510_v51  ;;  %v2623_v56 = vpop.eup %2622  ;;  %2285 = vmatpush3.bf16.msra.mxu1 %v2542_v44  ;;  %v2543_v43 = vld [vmem:[%s3433_s3 + $0x58] sm:$0xff]  }
  0xd9   : > { %2632 = vtanh.f32 %v550_v54  ;;  %v595_v57 = vpack.c.bf16 %v2621_v53, %v2623_v56  ;;  %2286 = vmatprep.subr.bf16.mxu1 %v2543_v43 }
  0xda   : > { %2634 = vtanh.f32 %v549_v55 }
  0xdb   : > { %v2625_v58 = vpop.eup %2624  ;;  %2272 = vmatprep.mubr.bf16.mxu1 %v595_v57 }
  0xdc   : > { %v2627_v59 = vpop.eup %2626  ;;  %2287 = vmatpush3.bf16.msra.mxu1 %v2543_v43 }
  0xdd   : > { %v596_v60 = vpack.c.bf16 %v2625_v58, %v2627_v59  ;;  %2288 = vmatprep.subr.bf16.mxu1 %v2544_v2 }
  0xdf   : > { %v2629_v61 = vpop.eup %2628  ;;  %2273 = vmatmul.mubr.bf16.gmra.mrb[8].mxu1 %v596_v60 }
  0xe0   : > { %v2631_v42 = vpop.eup %2630  ;;  %2289 = vmatpush3.bf16.msra.mxu1 %v2544_v2 }
  0xe1   : > { %v597_v62 = vpack.c.bf16 %v2629_v61, %v2631_v42  ;;  %2290 = vmatprep.subr.bf16.mxu1 %v2545_v3 }
  0xe3   : > { %v2633_v63 = vpop.eup %2632  ;;  %2276 = vmatprep.mubr.bf16.mxu1 %v597_v62 }
  0xe4   : > { %v2635_v0 = vpop.eup %2634  ;;  %2291 = vmatpush3.bf16.msra.mxu1 %v2545_v3 }
  0xe5   : > { %v598_v1 = vpack.c.bf16 %v2633_v63, %v2635_v0  ;;  %2292 = vmatprep.subr.bf16.mxu1 %v2546_v4 }
  0xe7   : > { %2277 = vmatmul.mubr.bf16.gmra.mrb[12].mxu1 %v598_v1 }
  0xe8   : > { %2293 = vmatpush3.bf16.msra.mxu1 %v2546_v4 }
  0xe9   : > { %2294 = vmatprep.subr.bf16.mxu1 %v2547_v5 }
  0xec   : > { %2295 = vmatpush3.bf16.msra.mxu1 %v2547_v5 }
 0x183   : > { %v2250_v9 = vpop.f32.mrb[0].mxu0 }
 0x184   : > { %v704_v11 = vpop.f32.mrb[1].mxu0  ;;  %v713_v13 = vadd.f32 %v2250_v9, %v3096_v10 }
 0x185   : > { %v2251_v12 = vpop.f32.mrb[2].mxu0  ;;  %v705_v16 = vadd.f32 %v3096_v10, %v704_v11 }
 0x186   : > { %v716_v14 = vadd.f32 %v2251_v12, %v3096_v10  ;;  %v707_v15 = vpop.f32.mrb[3].mxu0 }
 0x187   : > { %v708_v17 = vadd.f32 %v3096_v10, %v707_v15 }
 0x188   : > { %v832_v18 = vpack.c.bf16 %v716_v14, %v713_v13 }
 0x189   : > { %v831_v19 = vpack.c.bf16 %v708_v17, %v705_v16 }
 0x18b   : > { %2636 = vtanh.bf16 %v831_v19  ;;  %v2254_v20 = vpop.f32.mrb[4].mxu0 }
 0x18c   : > { %2638 = vtanh.bf16 %v832_v18  ;;  %v720_v21 = vpop.f32.mrb[5].mxu0  ;;  %v729_v23 = vadd.f32 %v2254_v20, %v3096_v10 }
 0x18d   : > { %v2255_v22 = vpop.f32.mrb[6].mxu0  ;;  %v721_v26 = vadd.f32 %v3096_v10, %v720_v21 }
 0x18e   : > { %v732_v24 = vadd.f32 %v2255_v22, %v3096_v10  ;;  %v723_v25 = vpop.f32.mrb[7].mxu0 }
 0x18f   : > { %v724_v27 = vadd.f32 %v3096_v10, %v723_v25 }
 0x190   : > { %v834_v28 = vpack.c.bf16 %v732_v24, %v729_v23 }
 0x191   : > { %v833_v29 = vpack.c.bf16 %v724_v27, %v721_v26 }
 0x193   : > { %2640 = vtanh.bf16 %v833_v29  ;;  %v2258_v30 = vpop.f32.mrb[8].mxu0 }
 0x194   : > { %2642 = vtanh.bf16 %v834_v28  ;;  %v736_v31 = vpop.f32.mrb[9].mxu0  ;;  %v745_v34 = vadd.f32 %v2258_v30, %v3096_v10 }
 0x195   : > { %v2259_v32 = vpop.f32.mrb[10].mxu0  ;;  %v737_v38 = vadd.f32 %v3096_v10, %v736_v31 }
 0x196   : > { %v2637_v33 = vpop.eup %2636  ;;  %v748_v35 = vadd.f32 %v2259_v32, %v3096_v10  ;;  %v739_v36 = vpop.f32.mrb[11].mxu0 }
 0x197   : > { %v2639_v37 = vpop.eup %2638  ;;  %v740_v39 = vadd.f32 %v3096_v10, %v739_v36  ;;  %2296 = vmatprep.mubr.bf16.mxu1 %v2637_v33 }
 0x198   : > { %v836_v40 = vpack.c.bf16 %v748_v35, %v745_v34  ;;  %2297 = vmatmul.mubr.bf16.vlgmr.msra.gmra.mrb[16].mxu1 %v2639_v37 }
 0x199   : > { %v835_v44 = vpack.c.bf16 %v740_v39, %v737_v38 }
 0x19b   : > { %2644 = vtanh.bf16 %v835_v44  ;;  %v2262_v45 = vpop.f32.mrb[12].mxu0 }
 0x19c   : > { %2646 = vtanh.bf16 %v836_v40  ;;  %v752_v46 = vpop.f32.mrb[13].mxu0  ;;  %v761_v41 = vadd.f32 %v2262_v45, %v3096_v10 }
 0x19d   : > { %v2263_v47 = vpop.f32.mrb[14].mxu0  ;;  %v753_v52 = vadd.f32 %v3096_v10, %v752_v46  ;;  %v2551_v46 = vld [vmem:[%s3433_s3 + $0x98] sm:$0xff]  }
 0x19e   : > { %v2641_v48 = vpop.eup %2640  ;;  %v764_v49 = vadd.f32 %v2263_v47, %v3096_v10  ;;  %v755_v50 = vpop.f32.mrb[15].mxu0  ;;  %2334 = vmatprep.subr.bf16.mxu0 %v2551_v46  ;;  %v2553_v47 = vld [vmem:[%s3433_s3 + $0xa8] sm:$0xff]  }
 0x19f   : > { %v2643_v51 = vpop.eup %2642  ;;  %v756_v53 = vadd.f32 %v3096_v10, %v755_v50  ;;  %2300 = vmatprep.mubr.bf16.mxu1 %v2641_v48  ;;  %2335 = vmatpush3.bf16.msra.mxu0 %v2551_v46  ;;  %v2554_v48 = vld [vmem:[%s3433_s3 + $0xb0] sm:$0xff]   ;;  %v2557_v50 = vld [vmem:[%s3433_s3 + $0xc8] sm:$0xff]  }
 0x1a0   : > { %v838_v54 = vpack.c.bf16 %v764_v49, %v761_v41  ;;  %2301 = vmatmul.mubr.bf16.gmra.mrb[20].mxu1 %v2643_v51  ;;  %v2555_v41 = vld [vmem:[%s3433_s3 + $0xb8] sm:$0xff]   ;;  %v2556_v49 = vld [vmem:[%s3433_s3 + $0xc0] sm:$0xff]   ;;  %v2558_v51 = vld [vmem:[%s3433_s3 + $0xd0] sm:$0xff]  }
 0x1a1   : > { %v837_v55 = vpack.c.bf16 %v756_v53, %v753_v52  ;;  %2376 = vmatprep.subr.bf16.mxu1 %v2556_v49  ;;  %v2559_v52 = vld [vmem:[%s3433_s3 + $0xd8] sm:$0xff]   ;;  %v2560_v53 = vld [vmem:[%s3433_s3 + $0xe0] sm:$0xff]  }
 0x1a2   : > { %v2266_v56 = vpop.f32.mrb[0].mxu1  ;;  %2377 = vmatpush3.bf16.msra.mxu1 %v2556_v49 }
 0x1a3   : > { %2648 = vtanh.bf16 %v837_v55  ;;  %v768_v57 = vpop.f32.mrb[1].mxu1  ;;  %v777_v59 = vadd.f32 %v2266_v56, %v3096_v10  ;;  %2378 = vmatprep.subr.bf16.mxu1 %v2557_v50  ;;  %v3166_v56 = vld [vmem:[%s3434_s4 + $0x1] ss:$0 sm:$0xff] }
 0x1a4   : > { %2650 = vtanh.bf16 %v838_v54  ;;  %v2267_v58 = vpop.f32.mrb[2].mxu1  ;;  %v769_v62 = vadd.f32 %v3096_v10, %v768_v57  ;;  %v2561_v54 = vld [vmem:[%s3433_s3 + $0xe8] sm:$0xff]  }
 0x1a5   : > { %v780_v60 = vadd.f32 %v2267_v58, %v3096_v10  ;;  %v771_v61 = vpop.f32.mrb[3].mxu1 }
 0x1a6   : > { %v2645_v42 = vpop.eup %2644  ;;  %v772_v63 = vadd.f32 %v3096_v10, %v771_v61  ;;  %2379 = vmatpush3.bf16.msra.mxu1 %v2557_v50 }
 0x1a7   : > { %v2647_v0 = vpop.eup %2646  ;;  %v840_v1 = vpack.c.bf16 %v780_v60, %v777_v59  ;;  %2304 = vmatprep.mubr.bf16.mxu1 %v2645_v42  ;;  %2380 = vmatprep.subr.bf16.mxu1 %v2558_v51 }
 0x1a8   : > { %v839_v43 = vpack.c.bf16 %v772_v63, %v769_v62  ;;  %2305 = vmatmul.mubr.bf16.gmra.mrb[24].mxu1 %v2647_v0 }
 0x1aa   : > { %2652 = vtanh.bf16 %v839_v43  ;;  %v2270_v2 = vpop.f32.mrb[4].mxu1  ;;  %2381 = vmatpush3.bf16.msra.mxu1 %v2558_v51 }
 0x1ab   : > { %v784_v3 = vpop.f32.mrb[5].mxu1  ;;  %2654 = vtanh.bf16 %v840_v1  ;;  %v793_v5 = vadd.f32 %v2270_v2, %v3096_v10  ;;  %2382 = vmatprep.subr.bf16.mxu1 %v2559_v52 }
 0x1ac   : > { %v2271_v4 = vpop.f32.mrb[6].mxu1  ;;  %v785_v9 = vadd.f32 %v3096_v10, %v784_v3 }
 0x1ad   : > { %v796_v6 = vadd.f32 %v2271_v4, %v3096_v10  ;;  %v787_v7 = vpop.f32.mrb[7].mxu1 }
 0x1ae   : > { %v2649_v8 = vpop.eup %2648  ;;  %v788_v11 = vadd.f32 %v3096_v10, %v787_v7  ;;  %2383 = vmatpush3.bf16.msra.mxu1 %v2559_v52 }
 0x1af   : > { %v2651_v12 = vpop.eup %2650  ;;  %v842_v13 = vpack.c.bf16 %v796_v6, %v793_v5  ;;  %2308 = vmatprep.mubr.bf16.mxu1 %v2649_v8  ;;  %2384 = vmatprep.subr.bf16.mxu1 %v2560_v53 }
 0x1b0   : > { %v841_v14 = vpack.c.bf16 %v788_v11, %v785_v9  ;;  %2309 = vmatmul.mubr.bf16.gmra.mrb[28].mxu1 %v2651_v12 }
 0x1b2   : > { %2656 = vtanh.bf16 %v841_v14  ;;  %v2274_v15 = vpop.f32.mrb[8].mxu1  ;;  %2385 = vmatpush3.bf16.msra.mxu1 %v2560_v53 }
 0x1b3   : > { %v800_v16 = vpop.f32.mrb[9].mxu1  ;;  %2658 = vtanh.bf16 %v842_v13  ;;  %v809_v19 = vadd.f32 %v2274_v15, %v3096_v10  ;;  %2386 = vmatprep.subr.bf16.mxu1 %v2561_v54 }
 0x1b4   : > { %v2275_v17 = vpop.f32.mrb[10].mxu1  ;;  %v801_v22 = vadd.f32 %v3096_v10, %v800_v16 }
 0x1b5   : > { %v2653_v18 = vpop.eup %2652  ;;  %v812_v20 = vadd.f32 %v2275_v17, %v3096_v10  ;;  %v803_v21 = vpop.f32.mrb[11].mxu1 }
 0x1b6   : > { %v804_v23 = vadd.f32 %v3096_v10, %v803_v21  ;;  %2312 = vmatprep.mubr.bf16.mxu1 %v2653_v18  ;;  %v2655_v24 = vpop.eup %2654  ;;  %2387 = vmatpush3.bf16.msra.mxu1 %v2561_v54 }
 0x1b7   : > { %v844_v25 = vpack.c.bf16 %v812_v20, %v809_v19 }
 0x1b8   : > { %v843_v26 = vpack.c.bf16 %v804_v23, %v801_v22  ;;  %2313 = vmatmul.mubr.bf16.gmra.mrb[32].mxu1 %v2655_v24 }
 0x1ba   : > { %2660 = vtanh.bf16 %v843_v26  ;;  %v2278_v27 = vpop.f32.mrb[12].mxu1 }
 0x1bb   : > { %v816_v28 = vpop.f32.mrb[13].mxu1  ;;  %2662 = vtanh.bf16 %v844_v25  ;;  %v825_v31 = vadd.f32 %v2278_v27, %v3096_v10 }
 0x1bc   : > { %v2279_v29 = vpop.f32.mrb[14].mxu1  ;;  %v817_v34 = vadd.f32 %v3096_v10, %v816_v28 }
 0x1bd   : > { %v2657_v30 = vpop.eup %2656  ;;  %v828_v32 = vadd.f32 %v2279_v29, %v3096_v10  ;;  %v819_v33 = vpop.f32.mrb[15].mxu1 }
 0x1be   : > { %v820_v35 = vadd.f32 %v3096_v10, %v819_v33  ;;  %2316 = vmatprep.mubr.bf16.mxu1 %v2657_v30  ;;  %v2659_v36 = vpop.eup %2658  ;;  %v2552_v10 = vld [vmem:[%s3433_s3 + $0xa0] sm:$0xff]  }
 0x1bf   : > { %v846_v37 = vpack.c.bf16 %v828_v32, %v825_v31  ;;  %2336 = vmatprep.subr.bf16.mxu0 %v2552_v10 }
 0x1c0   : > { %v845_v38 = vpack.c.bf16 %v820_v35, %v817_v34  ;;  %2317 = vmatmul.mubr.bf16.gmra.mrb[36].mxu1 %v2659_v36  ;;  %2337 = vmatpush3.bf16.msra.mxu0 %v2552_v10 }
 0x1c1   : > { %2338 = vmatprep.subr.bf16.mxu0 %v2553_v47 }
 0x1c2   : > { %2664 = vtanh.bf16 %v845_v38 }
 0x1c3   : > { %2666 = vtanh.bf16 %v846_v37 }
 0x1c4   : > { %2339 = vmatpush3.bf16.msra.mxu0 %v2553_v47 }
 0x1c5   : > { %v2661_v39 = vpop.eup %2660  ;;  %2340 = vmatprep.subr.bf16.mxu0 %v2554_v48 }
 0x1c6   : > { %2320 = vmatprep.mubr.bf16.mxu1 %v2661_v39  ;;  %v2663_v40 = vpop.eup %2662 }
 0x1c8   : > { %2321 = vmatmul.mubr.bf16.gmra.mrb[40].mxu1 %v2663_v40  ;;  %2341 = vmatpush3.bf16.msra.mxu0 %v2554_v48 }
 0x1c9   : > { %2342 = vmatprep.subr.bf16.mxu0 %v2555_v41 }
 0x1cc   : > { %2343 = vmatpush3.bf16.msra.mxu0 %v2555_v41 }
 0x1cd   : > { %v2665_v44 = vpop.eup %2664 }
 0x1ce   : > { %2324 = vmatprep.mubr.bf16.mxu1 %v2665_v44  ;;  %v2667_v45 = vpop.eup %2666 }
 0x1d0   : > { %2325 = vmatmul.mubr.bf16.gmra.mrb[44].mxu1 %v2667_v45 }
 0x26b   : > { %v2298_v55 = vpop.f32.mrb[16].mxu1 }
 0x26c   : > { %v970_v57 = vpop.f32.mrb[17].mxu1  ;;  %v979_v59 = vadd.f32 %v2298_v55, %v3166_v56 }
 0x26d   : > { %v2299_v58 = vpop.f32.mrb[18].mxu1  ;;  %v971_v42 = vadd.f32 %v3166_v56, %v970_v57 }
 0x26e   : > { %v982_v60 = vadd.f32 %v2299_v58, %v3166_v56  ;;  %v973_v61 = vpop.f32.mrb[19].mxu1 }
 0x26f   : > { %v974_v62 = vadd.f32 %v3166_v56, %v973_v61 }
 0x270   : > { %v1098_v63 = vpack.c.bf16 %v982_v60, %v979_v59 }
 0x271   : > { %v1097_v0 = vpack.c.bf16 %v974_v62, %v971_v42 }
 0x273   : > { %2668 = vtanh.bf16 %v1097_v0  ;;  %v2302_v1 = vpop.f32.mrb[20].mxu1 }
 0x274   : > { %2670 = vtanh.bf16 %v1098_v63  ;;  %v986_v43 = vpop.f32.mrb[21].mxu1  ;;  %v995_v3 = vadd.f32 %v2302_v1, %v3166_v56 }
 0x275   : > { %v2303_v2 = vpop.f32.mrb[22].mxu1  ;;  %v987_v6 = vadd.f32 %v3166_v56, %v986_v43 }
 0x276   : > { %v998_v4 = vadd.f32 %v2303_v2, %v3166_v56  ;;  %v989_v5 = vpop.f32.mrb[23].mxu1 }
 0x277   : > { %v990_v7 = vadd.f32 %v3166_v56, %v989_v5 }
 0x278   : > { %v1100_v8 = vpack.c.bf16 %v998_v4, %v995_v3 }
 0x279   : > { %v1099_v9 = vpack.c.bf16 %v990_v7, %v987_v6 }
 0x27b   : > { %2672 = vtanh.bf16 %v1099_v9  ;;  %v2306_v11 = vpop.f32.mrb[24].mxu1 }
 0x27c   : > { %2674 = vtanh.bf16 %v1100_v8  ;;  %v1002_v12 = vpop.f32.mrb[25].mxu1  ;;  %v1011_v15 = vadd.f32 %v2306_v11, %v3166_v56 }
 0x27d   : > { %v2307_v13 = vpop.f32.mrb[26].mxu1  ;;  %v1003_v19 = vadd.f32 %v3166_v56, %v1002_v12 }
 0x27e   : > { %v2669_v14 = vpop.eup %2668  ;;  %v1014_v16 = vadd.f32 %v2307_v13, %v3166_v56  ;;  %v1005_v17 = vpop.f32.mrb[27].mxu1 }
 0x27f   : > { %v2671_v18 = vpop.eup %2670  ;;  %v1006_v20 = vadd.f32 %v3166_v56, %v1005_v17  ;;  %2344 = vmatprep.mubr.bf16.mxu0 %v2669_v14 }
 0x280   : > { %v1102_v21 = vpack.c.bf16 %v1014_v16, %v1011_v15  ;;  %2345 = vmatmul.mubr.bf16.vlgmr.msra.gmra.mrb[16].mxu0 %v2671_v18 }
 0x281   : > { %v1101_v22 = vpack.c.bf16 %v1006_v20, %v1003_v19 }
 0x283   : > { %2676 = vtanh.bf16 %v1101_v22  ;;  %v2310_v23 = vpop.f32.mrb[28].mxu1 }
 0x284   : > { %2678 = vtanh.bf16 %v1102_v21  ;;  %v1018_v24 = vpop.f32.mrb[29].mxu1  ;;  %v1027_v27 = vadd.f32 %v2310_v23, %v3166_v56 }
 0x285   : > { %v2311_v25 = vpop.f32.mrb[30].mxu1  ;;  %v1019_v31 = vadd.f32 %v3166_v56, %v1018_v24  ;;  %v2562_v24 = vld [vmem:[%s3433_s3 + $0xf0] sm:$0xff]  }
 0x286   : > { %v2673_v26 = vpop.eup %2672  ;;  %v1030_v28 = vadd.f32 %v2311_v25, %v3166_v56  ;;  %v1021_v29 = vpop.f32.mrb[31].mxu1  ;;  %2388 = vmatprep.subr.bf16.mxu1 %v2562_v24  ;;  %v2564_v25 = vld [vmem:[%s3435_s5] sm:$0xff]  }
 0x287   : > { %v2675_v30 = vpop.eup %2674  ;;  %v1022_v32 = vadd.f32 %v3166_v56, %v1021_v29  ;;  %2348 = vmatprep.mubr.bf16.mxu0 %v2673_v26  ;;  %2389 = vmatpush3.bf16.msra.mxu1 %v2562_v24  ;;  %v2565_v26 = vld [vmem:[%s3435_s5 + $0x8] sm:$0xff]   ;;  %v2568_v29 = vld [vmem:[%s3435_s5 + $0x20] sm:$0xff]  }
 0x288   : > { %v1104_v33 = vpack.c.bf16 %v1030_v28, %v1027_v27  ;;  %2349 = vmatmul.mubr.bf16.gmra.mrb[20].mxu0 %v2675_v30  ;;  %2424 = vmatprep.subr.bf16.mxu0 %v2564_v25  ;;  %v2566_v27 = vld [vmem:[%s3435_s5 + $0x10] sm:$0xff]   ;;  %v2567_v28 = vld [vmem:[%s3435_s5 + $0x18] sm:$0xff]   ;;  %v2569_v30 = vld [vmem:[%s3435_s5 + $0x28] sm:$0xff]  }
 0x289   : > { %v1103_v34 = vpack.c.bf16 %v1022_v32, %v1019_v31  ;;  %2425 = vmatpush3.bf16.msra.mxu0 %v2564_v25  ;;  %v3227_v32 = vld [vmem:[%s3434_s4 + $0x2] ss:$0 sm:$0xff] }
 0x28a   : > { %2426 = vmatprep.subr.bf16.mxu0 %v2565_v26 }
 0x28b   : > { %2680 = vtanh.bf16 %v1103_v34  ;;  %v2314_v35 = vpop.f32.mrb[32].mxu1 }
 0x28c   : > { %2682 = vtanh.bf16 %v1104_v33  ;;  %v1034_v36 = vpop.f32.mrb[33].mxu1  ;;  %v1043_v39 = vadd.f32 %v2314_v35, %v3166_v56 }
 0x28d   : > { %v2315_v37 = vpop.f32.mrb[34].mxu1  ;;  %v1035_v46 = vadd.f32 %v3166_v56, %v1034_v36  ;;  %2427 = vmatpush3.bf16.msra.mxu0 %v2565_v26 }
 0x28e   : > { %v2677_v38 = vpop.eup %2676  ;;  %v1046_v40 = vadd.f32 %v2315_v37, %v3166_v56  ;;  %v1037_v44 = vpop.f32.mrb[35].mxu1  ;;  %2428 = vmatprep.subr.bf16.mxu0 %v2566_v27 }
 0x28f   : > { %v2679_v45 = vpop.eup %2678  ;;  %v1038_v10 = vadd.f32 %v3166_v56, %v1037_v44  ;;  %2352 = vmatprep.mubr.bf16.mxu0 %v2677_v38 }
 0x290   : > { %v1106_v47 = vpack.c.bf16 %v1046_v40, %v1043_v39  ;;  %2353 = vmatmul.mubr.bf16.gmra.mrb[24].mxu0 %v2679_v45 }
 0x291   : > { %v1105_v48 = vpack.c.bf16 %v1038_v10, %v1035_v46  ;;  %2429 = vmatpush3.bf16.msra.mxu0 %v2566_v27 }
 0x292   : > { %2430 = vmatprep.subr.bf16.mxu0 %v2567_v28 }
 0x293   : > { %2684 = vtanh.bf16 %v1105_v48  ;;  %v2318_v41 = vpop.f32.mrb[36].mxu1 }
 0x294   : > { %2686 = vtanh.bf16 %v1106_v47  ;;  %v1050_v49 = vpop.f32.mrb[37].mxu1  ;;  %v1059_v52 = vadd.f32 %v2318_v41, %v3166_v56 }
 0x295   : > { %v2319_v50 = vpop.f32.mrb[38].mxu1  ;;  %v1051_v57 = vadd.f32 %v3166_v56, %v1050_v49  ;;  %2431 = vmatpush3.bf16.msra.mxu0 %v2567_v28 }
 0x296   : > { %v2681_v51 = vpop.eup %2680  ;;  %v1062_v53 = vadd.f32 %v2319_v50, %v3166_v56  ;;  %v1053_v54 = vpop.f32.mrb[39].mxu1  ;;  %2432 = vmatprep.subr.bf16.mxu0 %v2568_v29 }
 0x297   : > { %v2683_v55 = vpop.eup %2682  ;;  %v1054_v58 = vadd.f32 %v3166_v56, %v1053_v54  ;;  %2356 = vmatprep.mubr.bf16.mxu0 %v2681_v51 }
 0x298   : > { %v1108_v59 = vpack.c.bf16 %v1062_v53, %v1059_v52  ;;  %2357 = vmatmul.mubr.bf16.gmra.mrb[28].mxu0 %v2683_v55 }
 0x299   : > { %v1107_v60 = vpack.c.bf16 %v1054_v58, %v1051_v57  ;;  %2433 = vmatpush3.bf16.msra.mxu0 %v2568_v29 }
 0x29a   : > { %2434 = vmatprep.subr.bf16.mxu0 %v2569_v30 }
 0x29b   : > { %2688 = vtanh.bf16 %v1107_v60  ;;  %v2322_v61 = vpop.f32.mrb[40].mxu1 }
 0x29c   : > { %2690 = vtanh.bf16 %v1108_v59  ;;  %v1066_v42 = vpop.f32.mrb[41].mxu1  ;;  %v1075_v0 = vadd.f32 %v2322_v61, %v3166_v56 }
 0x29d   : > { %v2323_v62 = vpop.f32.mrb[42].mxu1  ;;  %v1067_v3 = vadd.f32 %v3166_v56, %v1066_v42  ;;  %2435 = vmatpush3.bf16.msra.mxu0 %v2569_v30 }
 0x29e   : > { %v2685_v63 = vpop.eup %2684  ;;  %v1078_v1 = vadd.f32 %v2323_v62, %v3166_v56  ;;  %v1069_v43 = vpop.f32.mrb[43].mxu1 }
 0x29f   : > { %v2687_v2 = vpop.eup %2686  ;;  %v1070_v4 = vadd.f32 %v3166_v56, %v1069_v43  ;;  %2360 = vmatprep.mubr.bf16.mxu0 %v2685_v63 }
 0x2a0   : > { %v1110_v5 = vpack.c.bf16 %v1078_v1, %v1075_v0  ;;  %2361 = vmatmul.mubr.bf16.gmra.mrb[32].mxu0 %v2687_v2 }
 0x2a1   : > { %v1109_v6 = vpack.c.bf16 %v1070_v4, %v1067_v3 }
 0x2a3   : > { %2692 = vtanh.bf16 %v1109_v6  ;;  %v2326_v7 = vpop.f32.mrb[44].mxu1 }
 0x2a4   : > { %2694 = vtanh.bf16 %v1110_v5  ;;  %v1082_v8 = vpop.f32.mrb[45].mxu1  ;;  %v1091_v12 = vadd.f32 %v2326_v7, %v3166_v56 }
 0x2a5   : > { %v2327_v9 = vpop.f32.mrb[46].mxu1  ;;  %v1083_v16 = vadd.f32 %v3166_v56, %v1082_v8 }
 0x2a6   : > { %v2689_v11 = vpop.eup %2688  ;;  %v1094_v13 = vadd.f32 %v2327_v9, %v3166_v56  ;;  %v1085_v14 = vpop.f32.mrb[47].mxu1 }
 0x2a7   : > { %v2691_v15 = vpop.eup %2690  ;;  %v1086_v17 = vadd.f32 %v3166_v56, %v1085_v14  ;;  %2364 = vmatprep.mubr.bf16.mxu0 %v2689_v11  ;;  %v2563_v56 = vld [vmem:[%s3433_s3 + $0xf8] sm:$0xff]  }
 0x2a8   : > { %v1112_v18 = vpack.c.bf16 %v1094_v13, %v1091_v12  ;;  %2365 = vmatmul.mubr.bf16.gmra.mrb[36].mxu0 %v2691_v15  ;;  %2390 = vmatprep.subr.bf16.mxu1 %v2563_v56 }
 0x2a9   : > { %v1111_v19 = vpack.c.bf16 %v1086_v17, %v1083_v16  ;;  %2391 = vmatpush3.bf16.msra.mxu1 %v2563_v56 }
 0x2ab   : > { %2696 = vtanh.bf16 %v1111_v19 }
 0x2ac   : > { %2698 = vtanh.bf16 %v1112_v18 }
 0x2ae   : > { %v2693_v20 = vpop.eup %2692 }
 0x2af   : > { %v2695_v21 = vpop.eup %2694  ;;  %2368 = vmatprep.mubr.bf16.mxu0 %v2693_v20 }
 0x2b0   : > { %2369 = vmatmul.mubr.bf16.gmra.mrb[40].mxu0 %v2695_v21 }
 0x2b6   : > { %v2697_v22 = vpop.eup %2696 }
 0x2b7   : > { %v2699_v23 = vpop.eup %2698  ;;  %2372 = vmatprep.mubr.bf16.mxu0 %v2697_v22 }
 0x2b8   : > { %2373 = vmatmul.mubr.bf16.gmra.mrb[44].mxu0 %v2699_v23 }
 0x353   : > { %v2346_v31 = vpop.f32.mrb[16].mxu0 }
 0x354   : > { %v1236_v33 = vpop.f32.mrb[17].mxu0  ;;  %v1245_v35 = vadd.f32 %v2346_v31, %v3227_v32 }
 0x355   : > { %v2347_v34 = vpop.f32.mrb[18].mxu0  ;;  %v1237_v38 = vadd.f32 %v3227_v32, %v1236_v33 }
 0x356   : > { %v1248_v36 = vadd.f32 %v2347_v34, %v3227_v32  ;;  %v1239_v37 = vpop.f32.mrb[19].mxu0 }
 0x357   : > { %v1240_v39 = vadd.f32 %v3227_v32, %v1239_v37 }
 0x358   : > { %v1364_v40 = vpack.c.bf16 %v1248_v36, %v1245_v35 }
 0x359   : > { %v1363_v44 = vpack.c.bf16 %v1240_v39, %v1237_v38 }
 0x35b   : > { %2700 = vtanh.bf16 %v1363_v44  ;;  %v2350_v45 = vpop.f32.mrb[20].mxu0 }
 0x35c   : > { %2702 = vtanh.bf16 %v1364_v40  ;;  %v1252_v46 = vpop.f32.mrb[21].mxu0  ;;  %v1261_v47 = vadd.f32 %v2350_v45, %v3227_v32 }
 0x35d   : > { %v2351_v10 = vpop.f32.mrb[22].mxu0  ;;  %v1253_v49 = vadd.f32 %v3227_v32, %v1252_v46 }
 0x35e   : > { %v1264_v48 = vadd.f32 %v2351_v10, %v3227_v32  ;;  %v1255_v41 = vpop.f32.mrb[23].mxu0 }
 0x35f   : > { %v1256_v50 = vadd.f32 %v3227_v32, %v1255_v41 }
 0x360   : > { %v1366_v51 = vpack.c.bf16 %v1264_v48, %v1261_v47 }
 0x361   : > { %v1365_v52 = vpack.c.bf16 %v1256_v50, %v1253_v49 }
 0x363   : > { %2704 = vtanh.bf16 %v1365_v52  ;;  %v2354_v53 = vpop.f32.mrb[24].mxu0 }
 0x364   : > { %2706 = vtanh.bf16 %v1366_v51  ;;  %v1268_v54 = vpop.f32.mrb[25].mxu0  ;;  %v1277_v58 = vadd.f32 %v2354_v53, %v3227_v32 }
 0x365   : > { %v2355_v55 = vpop.f32.mrb[26].mxu0  ;;  %v1269_v42 = vadd.f32 %v3227_v32, %v1268_v54 }
 0x366   : > { %v2701_v57 = vpop.eup %2700  ;;  %v1280_v59 = vadd.f32 %v2355_v55, %v3227_v32  ;;  %v1271_v60 = vpop.f32.mrb[27].mxu0 }
 0x367   : > { %v2703_v61 = vpop.eup %2702  ;;  %v1272_v62 = vadd.f32 %v3227_v32, %v1271_v60  ;;  %2392 = vmatprep.mubr.bf16.mxu1 %v2701_v57 }
 0x368   : > { %v1368_v63 = vpack.c.bf16 %v1280_v59, %v1277_v58  ;;  %2393 = vmatmul.mubr.bf16.vlgmr.msra.gmra.mrb[48].mxu1 %v2703_v61 }
 0x369   : > { %v1367_v0 = vpack.c.bf16 %v1272_v62, %v1269_v42 }
 0x36b   : > { %2708 = vtanh.bf16 %v1367_v0  ;;  %v2358_v1 = vpop.f32.mrb[28].mxu0 }
 0x36c   : > { %2710 = vtanh.bf16 %v1368_v63  ;;  %v1284_v43 = vpop.f32.mrb[29].mxu0  ;;  %v1293_v4 = vadd.f32 %v2358_v1, %v3227_v32 }
 0x36d   : > { %v2359_v2 = vpop.f32.mrb[30].mxu0  ;;  %v1285_v8 = vadd.f32 %v3227_v32, %v1284_v43  ;;  %v2570_v43 = vld [vmem:[%s3435_s5 + $0x30] sm:$0xff]  }
 0x36e   : > { %v2705_v3 = vpop.eup %2704  ;;  %v1296_v5 = vadd.f32 %v2359_v2, %v3227_v32  ;;  %v1287_v6 = vpop.f32.mrb[31].mxu0  ;;  %2436 = vmatprep.subr.bf16.mxu0 %v2570_v43 }
 0x36f   : > { %v2707_v7 = vpop.eup %2706  ;;  %v1288_v9 = vadd.f32 %v3227_v32, %v1287_v6  ;;  %2396 = vmatprep.mubr.bf16.mxu1 %v2705_v3  ;;  %2437 = vmatpush3.bf16.msra.mxu0 %v2570_v43  ;;  %v3270_v3 = vld [vmem:[%s3434_s4 + $0x3] ss:$0 sm:$0xff] }
 0x370   : > { %v1370_v11 = vpack.c.bf16 %v1296_v5, %v1293_v4  ;;  %2397 = vmatmul.mubr.bf16.gmra.mrb[52].mxu1 %v2707_v7 }
 0x371   : > { %v1369_v12 = vpack.c.bf16 %v1288_v9, %v1285_v8 }
 0x373   : > { %2712 = vtanh.bf16 %v1369_v12  ;;  %v2362_v13 = vpop.f32.mrb[32].mxu0 }
 0x374   : > { %2714 = vtanh.bf16 %v1370_v11  ;;  %v1300_v14 = vpop.f32.mrb[33].mxu0  ;;  %v1309_v17 = vadd.f32 %v2362_v13, %v3227_v32 }
 0x375   : > { %v2363_v15 = vpop.f32.mrb[34].mxu0  ;;  %v1301_v21 = vadd.f32 %v3227_v32, %v1300_v14 }
 0x376   : > { %v2709_v16 = vpop.eup %2708  ;;  %v1312_v18 = vadd.f32 %v2363_v15, %v3227_v32  ;;  %v1303_v19 = vpop.f32.mrb[35].mxu0 }
 0x377   : > { %v2711_v20 = vpop.eup %2710  ;;  %v1304_v22 = vadd.f32 %v3227_v32, %v1303_v19  ;;  %2400 = vmatprep.mubr.bf16.mxu1 %v2709_v16 }
 0x378   : > { %v1372_v23 = vpack.c.bf16 %v1312_v18, %v1309_v17  ;;  %2401 = vmatmul.mubr.bf16.gmra.mrb[56].mxu1 %v2711_v20 }
 0x379   : > { %v1371_v24 = vpack.c.bf16 %v1304_v22, %v1301_v21 }
 0x37b   : > { %2716 = vtanh.bf16 %v1371_v24  ;;  %v2366_v56 = vpop.f32.mrb[36].mxu0 }
 0x37c   : > { %2718 = vtanh.bf16 %v1372_v23  ;;  %v1316_v25 = vpop.f32.mrb[37].mxu0  ;;  %v1325_v28 = vadd.f32 %v2366_v56, %v3227_v32 }
 0x37d   : > { %v2367_v26 = vpop.f32.mrb[38].mxu0  ;;  %v1317_v33 = vadd.f32 %v3227_v32, %v1316_v25 }
 0x37e   : > { %v2713_v27 = vpop.eup %2712  ;;  %v1328_v29 = vadd.f32 %v2367_v26, %v3227_v32  ;;  %v1319_v30 = vpop.f32.mrb[39].mxu0 }
 0x37f   : > { %v2715_v31 = vpop.eup %2714  ;;  %v1320_v34 = vadd.f32 %v3227_v32, %v1319_v30  ;;  %2404 = vmatprep.mubr.bf16.mxu1 %v2713_v27 }
 0x380   : > { %v1374_v35 = vpack.c.bf16 %v1328_v29, %v1325_v28  ;;  %2405 = vmatmul.mubr.bf16.gmra.mrb[60].mxu1 %v2715_v31 }
 0x381   : > { %v1373_v36 = vpack.c.bf16 %v1320_v34, %v1317_v33 }
 0x383   : > { %2720 = vtanh.bf16 %v1373_v36  ;;  %v2370_v37 = vpop.f32.mrb[40].mxu0 }
 0x384   : > { %2722 = vtanh.bf16 %v1374_v35  ;;  %v1332_v38 = vpop.f32.mrb[41].mxu0  ;;  %v1341_v44 = vadd.f32 %v2370_v37, %v3227_v32 }
 0x385   : > { %v2371_v39 = vpop.f32.mrb[42].mxu0  ;;  %v1333_v47 = vadd.f32 %v3227_v32, %v1332_v38 }
 0x386   : > { %v2717_v40 = vpop.eup %2716  ;;  %v1344_v45 = vadd.f32 %v2371_v39, %v3227_v32  ;;  %v1335_v46 = vpop.f32.mrb[43].mxu0 }
 0x387   : > { %v2719_v10 = vpop.eup %2718  ;;  %v1336_v48 = vadd.f32 %v3227_v32, %v1335_v46  ;;  %2408 = vmatprep.mubr.bf16.mxu1 %v2717_v40 }
 0x388   : > { %v1376_v41 = vpack.c.bf16 %v1344_v45, %v1341_v44  ;;  %2409 = vmatmul.mubr.bf16.gmra.mrb[64].mxu1 %v2719_v10 }
 0x389   : > { %v1375_v49 = vpack.c.bf16 %v1336_v48, %v1333_v47 }
 0x38b   : > { %2724 = vtanh.bf16 %v1375_v49  ;;  %v2374_v50 = vpop.f32.mrb[44].mxu0 }
 0x38c   : > { %2726 = vtanh.bf16 %v1376_v41  ;;  %v1348_v51 = vpop.f32.mrb[45].mxu0  ;;  %v1357_v54 = vadd.f32 %v2374_v50, %v3227_v32 }
 0x38d   : > { %v2375_v52 = vpop.f32.mrb[46].mxu0  ;;  %v1349_v59 = vadd.f32 %v3227_v32, %v1348_v51 }
 0x38e   : > { %v2721_v53 = vpop.eup %2720  ;;  %v1360_v55 = vadd.f32 %v2375_v52, %v3227_v32  ;;  %v1351_v57 = vpop.f32.mrb[47].mxu0 }
 0x38f   : > { %v2723_v58 = vpop.eup %2722  ;;  %v1352_v60 = vadd.f32 %v3227_v32, %v1351_v57  ;;  %2412 = vmatprep.mubr.bf16.mxu1 %v2721_v53  ;;  %v2571_v32 = vld [vmem:[%s3435_s5 + $0x38] sm:$0xff]  }
 0x390   : > { %v1378_v61 = vpack.c.bf16 %v1360_v55, %v1357_v54  ;;  %2413 = vmatmul.mubr.bf16.gmra.mrb[68].mxu1 %v2723_v58  ;;  %2438 = vmatprep.subr.bf16.mxu0 %v2571_v32 }
 0x391   : > { %v1377_v42 = vpack.c.bf16 %v1352_v60, %v1349_v59  ;;  %2439 = vmatpush3.bf16.msra.mxu0 %v2571_v32 }
 0x393   : > { %2728 = vtanh.bf16 %v1377_v42 }
 0x394   : > { %2730 = vtanh.bf16 %v1378_v61 }
 0x396   : > { %v2725_v62 = vpop.eup %2724 }
 0x397   : > { %v2727_v63 = vpop.eup %2726  ;;  %2416 = vmatprep.mubr.bf16.mxu1 %v2725_v62 }
 0x398   : > { %2417 = vmatmul.mubr.bf16.gmra.mrb[72].mxu1 %v2727_v63 }
 0x39e   : > { %v2729_v0 = vpop.eup %2728 }
 0x39f   : > { %v2731_v1 = vpop.eup %2730  ;;  %2420 = vmatprep.mubr.bf16.mxu1 %v2729_v0 }
 0x3a0   : > { %2421 = vmatmul.mubr.bf16.gmra.mrb[76].mxu1 %v2731_v1 }
 0x43b   : > { %v2394_v2 = vpop.f32.mrb[48].mxu1 }
 0x43c   : > { %v1502_v4 = vpop.f32.mrb[49].mxu1  ;;  %v1511_v6 = vadd.f32 %v2394_v2, %v3270_v3 }
 0x43d   : > { %v2395_v5 = vpop.f32.mrb[50].mxu1  ;;  %v1503_v9 = vadd.f32 %v3270_v3, %v1502_v4 }
 0x43e   : > { %v1514_v7 = vadd.f32 %v2395_v5, %v3270_v3  ;;  %v1505_v8 = vpop.f32.mrb[51].mxu1 }
 0x43f   : > { %v1506_v11 = vadd.f32 %v3270_v3, %v1505_v8 }
 0x440   : > { %v1630_v12 = vpack.c.bf16 %v1514_v7, %v1511_v6 }
 0x441   : > { %v1629_v13 = vpack.c.bf16 %v1506_v11, %v1503_v9 }
 0x443   : > { %2732 = vtanh.bf16 %v1629_v13  ;;  %v2398_v14 = vpop.f32.mrb[52].mxu1 }
 0x444   : > { %2734 = vtanh.bf16 %v1630_v12  ;;  %v1518_v15 = vpop.f32.mrb[53].mxu1  ;;  %v1527_v17 = vadd.f32 %v2398_v14, %v3270_v3 }
 0x445   : > { %v2399_v16 = vpop.f32.mrb[54].mxu1  ;;  %v1519_v20 = vadd.f32 %v3270_v3, %v1518_v15 }
 0x446   : > { %v1530_v18 = vadd.f32 %v2399_v16, %v3270_v3  ;;  %v1521_v19 = vpop.f32.mrb[55].mxu1 }
 0x447   : > { %v1522_v21 = vadd.f32 %v3270_v3, %v1521_v19 }
 0x448   : > { %v1632_v22 = vpack.c.bf16 %v1530_v18, %v1527_v17 }
 0x449   : > { %v1631_v23 = vpack.c.bf16 %v1522_v21, %v1519_v20 }
 0x44b   : > { %2736 = vtanh.bf16 %v1631_v23  ;;  %v2402_v24 = vpop.f32.mrb[56].mxu1 }
 0x44c   : > { %2738 = vtanh.bf16 %v1632_v22  ;;  %v1534_v56 = vpop.f32.mrb[57].mxu1  ;;  %v1543_v27 = vadd.f32 %v2402_v24, %v3270_v3 }
 0x44d   : > { %v2403_v25 = vpop.f32.mrb[58].mxu1  ;;  %v1535_v31 = vadd.f32 %v3270_v3, %v1534_v56 }
 0x44e   : > { %v2733_v26 = vpop.eup %2732  ;;  %v1546_v28 = vadd.f32 %v2403_v25, %v3270_v3  ;;  %v1537_v29 = vpop.f32.mrb[59].mxu1 }
 0x44f   : > { %v2735_v30 = vpop.eup %2734  ;;  %v1538_v33 = vadd.f32 %v3270_v3, %v1537_v29  ;;  %2440 = vmatprep.mubr.bf16.mxu0 %v2733_v26 }
 0x450   : > { %v1634_v34 = vpack.c.bf16 %v1546_v28, %v1543_v27  ;;  %2441 = vmatmul.mubr.bf16.vlgmr.msra.gmra.mrb[48].mxu0 %v2735_v30 }
 0x451   : > { %v1633_v35 = vpack.c.bf16 %v1538_v33, %v1535_v31 }
 0x453   : > { %2740 = vtanh.bf16 %v1633_v35  ;;  %v2406_v36 = vpop.f32.mrb[60].mxu1 }
 0x454   : > { %2742 = vtanh.bf16 %v1634_v34  ;;  %v1550_v37 = vpop.f32.mrb[61].mxu1  ;;  %v1559_v40 = vadd.f32 %v2406_v36, %v3270_v3 }
 0x455   : > { %v2407_v38 = vpop.f32.mrb[62].mxu1  ;;  %v1551_v10 = vadd.f32 %v3270_v3, %v1550_v37 }
 0x456   : > { %v2737_v39 = vpop.eup %2736  ;;  %v1562_v44 = vadd.f32 %v2407_v38, %v3270_v3  ;;  %v1553_v45 = vpop.f32.mrb[63].mxu1 }
 0x457   : > { %v2739_v46 = vpop.eup %2738  ;;  %v1554_v47 = vadd.f32 %v3270_v3, %v1553_v45  ;;  %2444 = vmatprep.mubr.bf16.mxu0 %v2737_v39 }
 0x458   : > { %v1636_v48 = vpack.c.bf16 %v1562_v44, %v1559_v40  ;;  %2445 = vmatmul.mubr.bf16.gmra.mrb[52].mxu0 %v2739_v46 }
 0x459   : > { %v1635_v41 = vpack.c.bf16 %v1554_v47, %v1551_v10 }
 0x45b   : > { %2744 = vtanh.bf16 %v1635_v41  ;;  %v2410_v49 = vpop.f32.mrb[64].mxu1 }
 0x45c   : > { %2746 = vtanh.bf16 %v1636_v48  ;;  %v1566_v50 = vpop.f32.mrb[65].mxu1  ;;  %v1575_v53 = vadd.f32 %v2410_v49, %v3270_v3 }
 0x45d   : > { %v2411_v51 = vpop.f32.mrb[66].mxu1  ;;  %v1567_v58 = vadd.f32 %v3270_v3, %v1566_v50 }
 0x45e   : > { %v2741_v52 = vpop.eup %2740  ;;  %v1578_v54 = vadd.f32 %v2411_v51, %v3270_v3  ;;  %v1569_v55 = vpop.f32.mrb[67].mxu1 }
 0x45f   : > { %v2743_v57 = vpop.eup %2742  ;;  %v1570_v59 = vadd.f32 %v3270_v3, %v1569_v55  ;;  %2448 = vmatprep.mubr.bf16.mxu0 %v2741_v52 }
 0x460   : > { %v1638_v60 = vpack.c.bf16 %v1578_v54, %v1575_v53  ;;  %2449 = vmatmul.mubr.bf16.gmra.mrb[56].mxu0 %v2743_v57 }
 0x461   : > { %v1637_v61 = vpack.c.bf16 %v1570_v59, %v1567_v58 }
 0x463   : > { %2748 = vtanh.bf16 %v1637_v61  ;;  %v2414_v42 = vpop.f32.mrb[68].mxu1 }
 0x464   : > { %2750 = vtanh.bf16 %v1638_v60  ;;  %v1582_v62 = vpop.f32.mrb[69].mxu1  ;;  %v1591_v1 = vadd.f32 %v2414_v42, %v3270_v3 }
 0x465   : > { %v2415_v63 = vpop.f32.mrb[70].mxu1  ;;  %v1583_v4 = vadd.f32 %v3270_v3, %v1582_v62 }
 0x466   : > { %v2745_v0 = vpop.eup %2744  ;;  %v1594_v43 = vadd.f32 %v2415_v63, %v3270_v3  ;;  %v1585_v32 = vpop.f32.mrb[71].mxu1 }
 0x467   : > { %v2747_v2 = vpop.eup %2746  ;;  %v1586_v5 = vadd.f32 %v3270_v3, %v1585_v32  ;;  %2452 = vmatprep.mubr.bf16.mxu0 %v2745_v0 }
 0x468   : > { %v1640_v6 = vpack.c.bf16 %v1594_v43, %v1591_v1  ;;  %2453 = vmatmul.mubr.bf16.gmra.mrb[60].mxu0 %v2747_v2 }
 0x469   : > { %v1639_v7 = vpack.c.bf16 %v1586_v5, %v1583_v4 }
 0x46b   : > { %2752 = vtanh.bf16 %v1639_v7  ;;  %v2418_v8 = vpop.f32.mrb[72].mxu1 }
 0x46c   : > { %2754 = vtanh.bf16 %v1640_v6  ;;  %v1598_v9 = vpop.f32.mrb[73].mxu1  ;;  %v1607_v13 = vadd.f32 %v2418_v8, %v3270_v3 }
 0x46d   : > { %v2419_v11 = vpop.f32.mrb[74].mxu1  ;;  %v1599_v17 = vadd.f32 %v3270_v3, %v1598_v9 }
 0x46e   : > { %v2749_v12 = vpop.eup %2748  ;;  %v1610_v14 = vadd.f32 %v2419_v11, %v3270_v3  ;;  %v1601_v15 = vpop.f32.mrb[75].mxu1 }
 0x46f   : > { %v2751_v16 = vpop.eup %2750  ;;  %v1602_v18 = vadd.f32 %v3270_v3, %v1601_v15  ;;  %2456 = vmatprep.mubr.bf16.mxu0 %v2749_v12 }
 0x470   : > { %v1642_v19 = vpack.c.bf16 %v1610_v14, %v1607_v13  ;;  %2457 = vmatmul.mubr.bf16.gmra.mrb[64].mxu0 %v2751_v16 }
 0x471   : > { %v1641_v20 = vpack.c.bf16 %v1602_v18, %v1599_v17 }
 0x473   : > { %2756 = vtanh.bf16 %v1641_v20  ;;  %v2422_v21 = vpop.f32.mrb[76].mxu1 }
 0x474   : > { %2758 = vtanh.bf16 %v1642_v19  ;;  %v1614_v22 = vpop.f32.mrb[77].mxu1  ;;  %v1623_v56 = vadd.f32 %v2422_v21, %v3270_v3 }
 0x475   : > { %v2423_v23 = vpop.f32.mrb[78].mxu1  ;;  %v1615_v28 = vadd.f32 %v3270_v3, %v1614_v22 }
 0x476   : > { %v2753_v24 = vpop.eup %2752  ;;  %v1626_v25 = vadd.f32 %v2423_v23, %v3270_v3  ;;  %v1617_v26 = vpop.f32.mrb[79].mxu1 }
 0x477   : > { %v2755_v27 = vpop.eup %2754  ;;  %v1618_v29 = vadd.f32 %v3270_v3, %v1617_v26  ;;  %2460 = vmatprep.mubr.bf16.mxu0 %v2753_v24  ;;  %v3310_v3 = vld [vmem:[%s3436_s6] ss:$0 sm:$0xff] }
 0x478   : > { %v1644_v30 = vpack.c.bf16 %v1626_v25, %v1623_v56  ;;  %2461 = vmatmul.mubr.bf16.gmra.mrb[68].mxu0 %v2755_v27 }
 0x479   : > { %v1643_v31 = vpack.c.bf16 %v1618_v29, %v1615_v28 }
 0x47b   : > { %2760 = vtanh.bf16 %v1643_v31 }
 0x47c   : > { %2762 = vtanh.bf16 %v1644_v30 }
 0x47e   : > { %v2757_v33 = vpop.eup %2756 }
 0x47f   : > { %v2759_v34 = vpop.eup %2758  ;;  %2464 = vmatprep.mubr.bf16.mxu0 %v2757_v33 }
 0x480   : > { %2465 = vmatmul.mubr.bf16.gmra.mrb[72].mxu0 %v2759_v34 }
 0x486   : > { %v2761_v35 = vpop.eup %2760 }
 0x487   : > { %v2763_v36 = vpop.eup %2762  ;;  %2468 = vmatprep.mubr.bf16.mxu0 %v2761_v35 }
 0x488   : > { %2469 = vmatmul.mubr.bf16.gmra.mrb[76].mxu0 %v2763_v36 }
 0x523   : > { %v2442_v37 = vpop.f32.mrb[48].mxu0 }
 0x524   : > { %v1775_v38 = vadd.f32 %v2442_v37, %v3310_v3  ;;  %v1766_v39 = vpop.f32.mrb[49].mxu0 }
 0x525   : > { %v1767_v40 = vadd.f32 %v3310_v3, %v1766_v39  ;;  %v2443_v44 = vpop.f32.mrb[50].mxu0 }
 0x526   : > { %1895 = vst [vmem:[%s3314_s16 + $0x10] sm:$0xff] %v1775_v38  ;;  %v1778_v45 = vadd.f32 %v2443_v44, %v3310_v3  ;;  %v1769_v46 = vpop.f32.mrb[51].mxu0 }
 0x527   : > { %1893 = vst [vmem:[%s3314_s16] sm:$0xff] %v1767_v40  ;;  %v1770_v10 = vadd.f32 %v3310_v3, %v1769_v46 }
 0x528   : > { %1896 = vst [vmem:[%s3314_s16 + $0x18] sm:$0xff] %v1778_v45 }
 0x529   : > { %1894 = vst [vmem:[%s3314_s16 + $0x8] sm:$0xff] %v1770_v10 }
 0x52b   : > { %v2446_v47 = vpop.f32.mrb[52].mxu0 }
 0x52c   : > { %v1791_v48 = vadd.f32 %v2446_v47, %v3310_v3  ;;  %v1782_v41 = vpop.f32.mrb[53].mxu0 }
 0x52d   : > { %v1783_v49 = vadd.f32 %v3310_v3, %v1782_v41  ;;  %v2447_v50 = vpop.f32.mrb[54].mxu0 }
 0x52e   : > { %1899 = vst [vmem:[%s3314_s16 + $0x30] sm:$0xff] %v1791_v48  ;;  %v1794_v51 = vadd.f32 %v2447_v50, %v3310_v3  ;;  %v1785_v52 = vpop.f32.mrb[55].mxu0 }
 0x52f   : > { %1897 = vst [vmem:[%s3314_s16 + $0x20] sm:$0xff] %v1783_v49  ;;  %v1786_v53 = vadd.f32 %v3310_v3, %v1785_v52 }
 0x530   : > { %1900 = vst [vmem:[%s3314_s16 + $0x38] sm:$0xff] %v1794_v51 }
 0x531   : > { %1898 = vst [vmem:[%s3314_s16 + $0x28] sm:$0xff] %v1786_v53 }
 0x533   : > { %v2450_v54 = vpop.f32.mrb[56].mxu0 }
 0x534   : > { %v1807_v55 = vadd.f32 %v2450_v54, %v3310_v3  ;;  %v1798_v57 = vpop.f32.mrb[57].mxu0 }
 0x535   : > { %v1799_v58 = vadd.f32 %v3310_v3, %v1798_v57  ;;  %v2451_v59 = vpop.f32.mrb[58].mxu0 }
 0x536   : > { %1903 = vst [vmem:[%s3314_s16 + $0x50] sm:$0xff] %v1807_v55  ;;  %v1810_v60 = vadd.f32 %v2451_v59, %v3310_v3  ;;  %v1801_v61 = vpop.f32.mrb[59].mxu0 }
 0x537   : > { %1901 = vst [vmem:[%s3314_s16 + $0x40] sm:$0xff] %v1799_v58  ;;  %v1802_v42 = vadd.f32 %v3310_v3, %v1801_v61 }
 0x538   : > { %1904 = vst [vmem:[%s3314_s16 + $0x58] sm:$0xff] %v1810_v60 }
 0x539   : > { %1902 = vst [vmem:[%s3314_s16 + $0x48] sm:$0xff] %v1802_v42 }
 0x53b   : > { %v2454_v62 = vpop.f32.mrb[60].mxu0 }
 0x53c   : > { %v1823_v63 = vadd.f32 %v2454_v62, %v3310_v3  ;;  %v1814_v0 = vpop.f32.mrb[61].mxu0 }
 0x53d   : > { %v1815_v1 = vadd.f32 %v3310_v3, %v1814_v0  ;;  %v2455_v43 = vpop.f32.mrb[62].mxu0 }
 0x53e   : > { %1907 = vst [vmem:[%s3314_s16 + $0x70] sm:$0xff] %v1823_v63  ;;  %v1826_v32 = vadd.f32 %v2455_v43, %v3310_v3  ;;  %v1817_v2 = vpop.f32.mrb[63].mxu0 }
 0x53f   : > { %1905 = vst [vmem:[%s3314_s16 + $0x60] sm:$0xff] %v1815_v1  ;;  %v1818_v4 = vadd.f32 %v3310_v3, %v1817_v2 }
 0x540   : > { %1908 = vst [vmem:[%s3314_s16 + $0x78] sm:$0xff] %v1826_v32 }
 0x541   : > { %1906 = vst [vmem:[%s3314_s16 + $0x68] sm:$0xff] %v1818_v4 }
 0x543   : > { %v2458_v5 = vpop.f32.mrb[64].mxu0 }
 0x544   : > { %v1839_v6 = vadd.f32 %v2458_v5, %v3310_v3  ;;  %v1830_v7 = vpop.f32.mrb[65].mxu0 }
 0x545   : > { %v1831_v8 = vadd.f32 %v3310_v3, %v1830_v7  ;;  %v2459_v9 = vpop.f32.mrb[66].mxu0 }
 0x546   : > { %1911 = vst [vmem:[%s3314_s16 + $0x90] sm:$0xff] %v1839_v6  ;;  %v1842_v11 = vadd.f32 %v2459_v9, %v3310_v3  ;;  %v1833_v12 = vpop.f32.mrb[67].mxu0 }
 0x547   : > { %1909 = vst [vmem:[%s3314_s16 + $0x80] sm:$0xff] %v1831_v8  ;;  %v1834_v13 = vadd.f32 %v3310_v3, %v1833_v12 }
 0x548   : > { %1912 = vst [vmem:[%s3314_s16 + $0x98] sm:$0xff] %v1842_v11 }
 0x549   : > { %1910 = vst [vmem:[%s3314_s16 + $0x88] sm:$0xff] %v1834_v13 }
 0x54b   : > { %v2462_v14 = vpop.f32.mrb[68].mxu0 }
 0x54c   : > { %v1855_v15 = vadd.f32 %v2462_v14, %v3310_v3  ;;  %v1846_v16 = vpop.f32.mrb[69].mxu0 }
 0x54d   : > { %v1847_v17 = vadd.f32 %v3310_v3, %v1846_v16  ;;  %v2463_v18 = vpop.f32.mrb[70].mxu0 }
 0x54e   : > { %1915 = vst [vmem:[%s3314_s16 + $0xb0] sm:$0xff] %v1855_v15  ;;  %v1858_v19 = vadd.f32 %v2463_v18, %v3310_v3  ;;  %v1849_v20 = vpop.f32.mrb[71].mxu0 }
 0x54f   : > { %1913 = vst [vmem:[%s3314_s16 + $0xa0] sm:$0xff] %v1847_v17  ;;  %v1850_v21 = vadd.f32 %v3310_v3, %v1849_v20 }
 0x550   : > { %1916 = vst [vmem:[%s3314_s16 + $0xb8] sm:$0xff] %v1858_v19 }
 0x551   : > { %1914 = vst [vmem:[%s3314_s16 + $0xa8] sm:$0xff] %v1850_v21 }
 0x553   : > { %v2466_v22 = vpop.f32.mrb[72].mxu0 }
 0x554   : > { %v1871_v23 = vadd.f32 %v2466_v22, %v3310_v3  ;;  %v1862_v24 = vpop.f32.mrb[73].mxu0 }
 0x555   : > { %v1863_v56 = vadd.f32 %v3310_v3, %v1862_v24  ;;  %v2467_v25 = vpop.f32.mrb[74].mxu0 }
 0x556   : > { %1919 = vst [vmem:[%s3314_s16 + $0xd0] sm:$0xff] %v1871_v23  ;;  %v1874_v26 = vadd.f32 %v2467_v25, %v3310_v3  ;;  %v1865_v27 = vpop.f32.mrb[75].mxu0 }
 0x557   : > { %1917 = vst [vmem:[%s3314_s16 + $0xc0] sm:$0xff] %v1863_v56  ;;  %v1866_v28 = vadd.f32 %v3310_v3, %v1865_v27 }
 0x558   : > { %1920 = vst [vmem:[%s3314_s16 + $0xd8] sm:$0xff] %v1874_v26 }
 0x559   : > { %1918 = vst [vmem:[%s3314_s16 + $0xc8] sm:$0xff] %v1866_v28 }
 0x55b   : > { %v2470_v29 = vpop.f32.mrb[76].mxu0 }
 0x55c   : > { %v1887_v30 = vadd.f32 %v2470_v29, %v3310_v3  ;;  %v1878_v31 = vpop.f32.mrb[77].mxu0 }
 0x55d   : > { %v1879_v33 = vadd.f32 %v3310_v3, %v1878_v31  ;;  %v2471_v34 = vpop.f32.mrb[78].mxu0 }
 0x55e   : > { %1923 = vst [vmem:[%s3314_s16 + $0xf0] sm:$0xff] %v1887_v30  ;;  %v1890_v35 = vadd.f32 %v2471_v34, %v3310_v3  ;;  %v1881_v36 = vpop.f32.mrb[79].mxu0 }
 0x55f   : > { %1921 = vst [vmem:[%s3314_s16 + $0xe0] sm:$0xff] %v1879_v33  ;;  %v1882_v37 = vadd.f32 %v3310_v3, %v1881_v36 }
 0x560   : > { %1924 = vst [vmem:[%s3314_s16 + $0xf8] sm:$0xff] %v1890_v35 }
 0x561   : > { %1922 = vst [vmem:[%s3314_s16 + $0xe8] sm:$0xff] %v1882_v37 }
 0x562   : > { %2777 = shalt.err (!%p2774_p3)
}
 0x563   : > { %s2778_s23 = scalar_lea.hbm %s3379_s21, 4096  ;;  %s2782_s15 = scalar_lea.hbm %s3437_s7, 8192 }
 0x564   : > { %p2779_p4 = scmp.ne.s32.totalorder %s3379_s21, %s2778_s23  ;;  %p2783_p9 = scmp.lt.u32.totalorder %s3379_s21, %s3437_s7 }
 0x565   : > { %p2784_p10 = scmp.lt.u32.totalorder %s2782_s15, %s2778_s23  ;;  %p2786_p12 = scmp.lt.u32.totalorder %s2778_s23, %s3379_s21 }
 0x566   : > { %p2780_p7 = pnand %p2779_p4, %p2910_p5 }
 0x567   : > { %p2785_p11 = por %p2784_p10, %p2783_p9 }
 0x568   : > { %p2781_p8 = pneg %p2780_p7 }
 0x569   : > { %p2787_p13 = por %p2786_p12, %p2785_p11 }
 0x56b   : > { %p2788_p0 = pnand %p2787_p13, %p2781_p8 }
 0x56d   : > { %2791 = shalt.err (!%p2788_p0)
}
 0x56e   : > { %s2830_s19 = smov 128   ;;  %s2831_s20 = smov 8  }
 0x56f   : > { %2488 = dma.vmem_to_hbm [thread:$0]  (%p2910_p5), %s3381_s18, 4096, %s3379_s21, %s3389_s28, %s2830_s19, %s2830_s19, %s2831_s20  }
 0x570 PF: > { %p2494_p1 = scmp.ge.s32.totalorder %s2826_s27, 2  ;;  %s1954_s22 = sand.u32 1, %s2814_s24  }
 0x571   : > { %s1955_s29 = scalar_lea.sflag [#allocation3], %s1954_s22 }
 0x572   : > { %p2491_p2 = pnand %p2494_p1, %p2914_p6 }
 0x574   : > { %2809 = dma.done.wait (!%p2491_p2), %s1955_s29, 4096  }
 0x575   : > { %2811 = vsyncadd (!%p2491_p2), %s1955_s29, 4294963200  ;;  %p17_p3 = scmp.ge.s32.totalorder %s2897_s30, 4   ;;  %s3440_s24 = smov %s2818_s25 }
 0x576   : > { %s3441_s25 = smov %s2822_s26  ;;  %s3442_s26 = smov %s2908_s10 }
 0x577   : > { %s3443_s27 = smov %s2897_s30  ;;  %19 = sbr.rel (!%p17_p3) target bundleno = 3 (0x3), region = 89 }
 0x57e   :  { %1960 = vsyncpa [#allocation3], 1 }
 0x57f   :  { %1962 = vsyncpa [#allocation3 + $0x1], 1 }

</bundles_post_ra>
